<compile_context>
chip_gen: v6e
topology: v6e:2x2x1
jax: 0.10.0
libtpu: 0.0.40
codegen_flags: <defaults>
</compile_context>

<pallas_src>
import functools

import jax
import jax.numpy as jnp
from jax.experimental import pallas as pl
from jax.experimental.pallas import tpu as pltpu

IN_DIM = 1280
EPS = 1e-5


def _round_up(x, m):
    return (x + m - 1) // m * m


def mlp_instnorm_kernel(x_ref, w1_ref, b1_ref, w2_ref, b2_ref, w3_ref, b3_ref,
                        o_ref, *, true_hidden):
    """One row-tile, fully fused in VMEM: y = fc3(relu(IN(fc2(relu(IN(fc1(x)))))))."""
    hp = w1_ref.shape[1]                  # lane-padded hidden width (static)
    inv_n = 1.0 / float(true_hidden)
    cdt = w1_ref.dtype                    # MXU compute dtype (bf16)

    # Lane mask for the padded hidden tail (only when hidden % 128 != 0).
    lane_mask = None
    if hp != true_hidden:
        lane_mask = (jax.lax.broadcasted_iota(jnp.int32, (1, hp), 1)
                     < true_hidden)

    def instnorm(h):
        # PyTorch InstanceNorm1d semantics: per-row mean / biased variance over
        # the TRUE hidden dim, eps=1e-5, no affine.  Two-pass (centered)
        # variance is a sum of squares and never goes negative.  Padded lanes
        # are zeroed so the sums divided by the true hidden size stay exact;
        # this relies on the padded weight columns / bias entries being exactly
        # zero (guaranteed by prepare_params).
        mean = jnp.sum(h, axis=-1, keepdims=True) * inv_n
        centered = h - mean
        if lane_mask is not None:
            centered = jnp.where(lane_mask, centered, 0.0)
        var = jnp.sum(centered * centered, axis=-1, keepdims=True) * inv_n
        return centered * jax.lax.rsqrt(var + EPS)

    # fc1 -> instance norm -> (dropout = identity in eval) -> relu.
    # x streams in f32; the bf16 cast happens here (saves a wrapper HBM pass).
    h = jnp.dot(x_ref[...].astype(cdt), w1_ref[...],
                preferred_element_type=jnp.float32)
    h = h + b1_ref[...]
    h = jnp.maximum(instnorm(h), 0.0)
    # TODO(synk): training-mode dropout (p=0.1) not implemented; eval-mode identity.

    # fc2 -> instance norm -> relu
    h = jnp.dot(h.astype(cdt), w2_ref[...], preferred_element_type=jnp.float32)
    h = h + b2_ref[...]
    h = jnp.maximum(instnorm(h), 0.0)

    # fc3 (true output width; padded hidden rows of w3 are zero)
    y = jnp.dot(h.astype(cdt), w3_ref[...], preferred_element_type=jnp.float32)
    y = y + b3_ref[...]
    o_ref[...] = y.astype(o_ref.dtype)


def prepare_params(w1, b1, w2, b2, w3, b3, compute_dtype=jnp.bfloat16):
    """Pad hidden to a 128-lane multiple and cast weights to the MXU dtype.

    Call ONCE per model (outside the per-forward path) so the pad/cast does not
    re-run an HBM pass over the weights every call.  Padded weight columns /
    rows and padded bias entries are exactly zero; the kernel's norm math
    relies on that invariant.  Weights are (in, out) layout, biases 1-D.
    """
    hidden = int(w1.shape[1])
    out_dim = int(w3.shape[1])
    hp = _round_up(hidden, 128)

    def pad2(a, r, c):
        a = jnp.asarray(a)
        return jnp.pad(a, ((0, r - a.shape[0]), (0, c - a.shape[1])))

    w1p = pad2(w1, IN_DIM, hp).astype(compute_dtype)
    w2p = pad2(w2, hp, hp).astype(compute_dtype)
    w3p = pad2(w3, hp, out_dim).astype(compute_dtype)
    b1p = pad2(jnp.asarray(b1).reshape(1, -1), 1, hp).astype(jnp.float32)
    b2p = pad2(jnp.asarray(b2).reshape(1, -1), 1, hp).astype(jnp.float32)
    b3p = jnp.asarray(b3).reshape(1, -1).astype(jnp.float32)
    return (w1p, b1p, w2p, b2p, w3p, b3p), hidden


@functools.partial(
    jax.jit, static_argnames=("hidden_dim", "tm", "single_buffer_weights"))
def instance_norm_mlp(x, w1p, b1p, w2p, b2p, w3p, b3p, *, hidden_dim,
                      tm=512, single_buffer_weights=True):
    """x: (B, S, 1280) float32.  Padded params come from prepare_params()."""
    B, S, in_dim = x.shape
    assert in_dim == IN_DIM
    hp = w1p.shape[1]
    out_dim = w3p.shape[1]
    M = B * S

    # Row tile: large default (amortizes the ~0.35us/step grid overhead and the
    # resident-weight reuse across more LHS rows).  For small inputs shrink so
    # the parallel grid keeps ~8 steps (pipelining + 2-TensorCore balance on
    # v7x).  Multiple of 8 (f32 sublane granularity).
    tm_eff = max(8, min(_round_up(tm, 8), _round_up(pl.cdiv(M, 8), 8)))
    grid_m = pl.cdiv(M, tm_eff)
    Mp = grid_m * tm_eff

    x2 = x.reshape(M, IN_DIM)
    if Mp != M:
        # Zero rows are finite through the norm (var=0 -> rsqrt(eps)) and are
        # sliced off below; only hit when 8-row granularity doesn't divide M.
        x2 = jnp.pad(x2, ((0, Mp - M), (0, 0)))

    # Weights / biases have constant index_maps (DMA'd once, resident in VMEM):
    # request single buffering so they are not pointlessly double-buffered
    # (frees VMEM for bigger row tiles; matters most under v7x's 64 MiB VMEM).
    wkw = dict(pipeline_mode=pl.Buffered(1)) if single_buffer_weights else {}

    def const_spec(shape):
        return pl.BlockSpec(shape, lambda i: (0, 0), **wkw)

    # Scoped-VMEM limit from the actual working set (2x headroom), floored at
    # the 32 MiB default and capped at 64 MiB (v7x physical VMEM per core).
    xb = jnp.dtype(x.dtype).itemsize
    wb = jnp.dtype(w1p.dtype).itemsize
    nbuf = 1 if single_buffer_weights else 2
    est = (2 * tm_eff * IN_DIM * xb                                 # x tile (dbl buf)
           + 2 * tm_eff * out_dim * 4                               # out tile (dbl buf)
           + nbuf * (IN_DIM * hp + hp * hp + hp * out_dim) * wb     # weights
           + nbuf * (2 * hp + out_dim) * 4                          # biases
           + 4 * tm_eff * hp * 4)                                   # f32 intermediates
    vmem_limit = int(min(max(2 * est, 32 * 1024 * 1024), 64 * 1024 * 1024))

    kernel = functools.partial(mlp_instnorm_kernel, true_hidden=hidden_dim)

    out = pl.pallas_call(
        kernel,
        out_shape=jax.ShapeDtypeStruct((Mp, out_dim), x.dtype),
        grid_spec=pltpu.PrefetchScalarGridSpec(
            num_scalar_prefetch=0,
            grid=(grid_m,),
            in_specs=[
                pl.BlockSpec((tm_eff, IN_DIM), lambda i: (i, 0)),
                const_spec((IN_DIM, hp)),
                const_spec((1, hp)),
                const_spec((hp, hp)),
                const_spec((1, hp)),
                const_spec((hp, out_dim)),
                const_spec((1, out_dim)),
            ],
            out_specs=pl.BlockSpec((tm_eff, out_dim), lambda i: (i, 0)),
        ),
        compiler_params=pltpu.CompilerParams(
            dimension_semantics=("parallel",),
            vmem_limit_bytes=vmem_limit,
        ),
    )(x2, w1p, b1p, w2p, b2p, w3p, b3p)

    if Mp != M:
        out = out[:M]
    return out.reshape(B, S, out_dim)


def _reference(x2, w1, b1, w2, b2, w3, b3, mirror_bf16):
    """Pure-JAX reference.  mirror_bf16=True mimics the kernel's dtype strategy
    (bf16 streamed operands, f32 accumulation / norm math); False is the exact
    f32 math of the PyTorch module (eval mode)."""

    def cd(a):
        if mirror_bf16:
            return a.astype(jnp.bfloat16).astype(jnp.float32)
        return a.astype(jnp.float32)

    def instnorm(h):
        mean = jnp.mean(h, axis=-1, keepdims=True)
        var = jnp.mean(jnp.square(h - mean), axis=-1, keepdims=True)
        return (h - mean) * jax.lax.rsqrt(var + EPS)

    hi = jax.lax.Precision.HIGHEST
    h = jnp.dot(cd(x2), cd(w1), precision=hi) + b1.reshape(1, -1)
    h = jnp.maximum(instnorm(h), 0.0)
    h = jnp.dot(cd(h), cd(w2), precision=hi) + b2.reshape(1, -1)
    h = jnp.maximum(instnorm(h), 0.0)
    return jnp.dot(cd(h), cd(w3), precision=hi) + b3.reshape(1, -1)


if __name__ == "__main__":
    hidden_dim = 32
    out_dim = 16
    B, S = 2, 16
    dtype = jnp.float32

    key = jax.random.PRNGKey(0)
    kx, k1, k2, k3, kb1, kb2, kb3 = jax.random.split(key, 7)

    x = jax.random.normal(kx, (B, S, IN_DIM), dtype=dtype)

    def linear_params(kw, kb, fan_in, fan_out):
        # PyTorch nn.Linear init; W is (out, in) then transposed to (in, out).
        bound = 1.0 / jnp.sqrt(fan_in)
        w = jax.random.uniform(kw, (fan_out, fan_in), dtype, -bound, bound)
        b = jax.random.uniform(kb, (fan_out,), dtype, -bound, bound)
        return w.T, b

    w1, b1 = linear_params(k1, kb1, IN_DIM, hidden_dim)
    w2, b2 = linear_params(k2, kb2, hidden_dim, hidden_dim)
    w3, b3 = linear_params(k3, kb3, hidden_dim, out_dim)

    params, hidden = prepare_params(w1, b1, w2, b2, w3, b3)

    try:
        y = jax.block_until_ready(
            instance_norm_mlp(x, *params, hidden_dim=hidden))
    except Exception:
        # Fallback if this Pallas build rejects pl.Buffered(1) single buffering
        # of the resident weight blocks.
        y = jax.block_until_ready(
            instance_norm_mlp(x, *params, hidden_dim=hidden,
                              single_buffer_weights=False))

    assert y.shape == (B, S, out_dim)

    x2 = x.reshape(B * S, IN_DIM)
    # Tight check vs. a reference mirroring the kernel's bf16 rounding.
    y_bf16 = _reference(x2, w1, b1, w2, b2, w3, b3,
                        mirror_bf16=True).reshape(B, S, out_dim)
    err_bf16 = float(jnp.max(jnp.abs(y - y_bf16)))
    assert jnp.allclose(y, y_bf16, atol=1e-2, rtol=1e-2), err_bf16
    # Looser check vs. the pure-f32 PyTorch-equivalent math (bounds bf16 drift).
    y_f32 = _reference(x2, w1, b1, w2, b2, w3, b3,
                       mirror_bf16=False).reshape(B, S, out_dim)
    err_f32 = float(jnp.max(jnp.abs(y - y_f32)))
    assert jnp.allclose(y, y_f32, atol=1e-1, rtol=1e-1), err_f32

    print("KERNEL_OK")
</pallas_src>

<mosaic_0001>
module attributes {stable_mosaic.version = 11 : i64} {
  func.func @mlp_instnorm_kernel(%arg0: i32, %arg1: memref<8x1280xf32, #tpu.memory_space<vmem>>, %arg2: memref<1280x128xbf16, #tpu.memory_space<vmem>>, %arg3: memref<1x128xf32, #tpu.memory_space<vmem>>, %arg4: memref<128x128xbf16, #tpu.memory_space<vmem>>, %arg5: memref<1x128xf32, #tpu.memory_space<vmem>>, %arg6: memref<128x16xbf16, #tpu.memory_space<vmem>>, %arg7: memref<1x16xf32, #tpu.memory_space<vmem>>, %arg8: memref<8x16xf32, #tpu.memory_space<vmem>>) attributes {dimension_semantics = [#tpu.dimension_semantics<parallel>], iteration_bounds = array<i64: 4>, scalar_prefetch = 0 : i64, scratch_operands = 0 : i64, tpu.core_type = #tpu.core_type<tc>, window_params = [{transform_indices = @transform_0, window_bounds = array<i64: 8, 1280>}, {pipeline_mode = #tpu.pipeline_mode<synchronous>, transform_indices = @transform_1, window_bounds = array<i64: 1280, 128>}, {pipeline_mode = #tpu.pipeline_mode<synchronous>, transform_indices = @transform_2, window_bounds = array<i64: 1, 128>}, {pipeline_mode = #tpu.pipeline_mode<synchronous>, transform_indices = @transform_3, window_bounds = array<i64: 128, 128>}, {pipeline_mode = #tpu.pipeline_mode<synchronous>, transform_indices = @transform_4, window_bounds = array<i64: 1, 128>}, {pipeline_mode = #tpu.pipeline_mode<synchronous>, transform_indices = @transform_5, window_bounds = array<i64: 128, 16>}, {pipeline_mode = #tpu.pipeline_mode<synchronous>, transform_indices = @transform_6, window_bounds = array<i64: 1, 16>}, {transform_indices = @transform_7, window_bounds = array<i64: 8, 16>}]} {
    %0 = tpu.iota {dimensions = array<i32: 1>} : vector<1x128xi32>
    %c32_i32 = arith.constant 32 : i32
    %1 = vector.broadcast %c32_i32 : i32 to vector<1x128xi32>
    %2 = arith.cmpi slt, %0, %1 : vector<1x128xi32>
    %c0 = arith.constant 0 : index
    %c0_0 = arith.constant 0 : index
    %3 = vector.load %arg1[%c0, %c0_0] : memref<8x1280xf32, #tpu.memory_space<vmem>>, vector<8x1280xf32>
    %4 = arith.truncf %3 : vector<8x1280xf32> to vector<8x1280xbf16>
    %c0_1 = arith.constant 0 : index
    %c0_2 = arith.constant 0 : index
    %5 = vector.load %arg2[%c0_1, %c0_2] : memref<1280x128xbf16, #tpu.memory_space<vmem>>, vector<1280x128xbf16>
    %cst = arith.constant dense<0.000000e+00> : vector<8x128xf32>
    %6 = tpu.matmul %4, %5, %cst {dimension_numbers = #tpu.dot_dimension_numbers<[1], [0], [0], [1], [0, 0, 1, 1], [], []>} : vector<8x1280xbf16>, vector<1280x128xbf16>, vector<8x128xf32> -> vector<8x128xf32>
    %c0_3 = arith.constant 0 : index
    %c0_4 = arith.constant 0 : index
    %7 = vector.load %arg3[%c0_3, %c0_4] : memref<1x128xf32, #tpu.memory_space<vmem>>, vector<1x128xf32>
    %8 = vector.broadcast %7 : vector<1x128xf32> to vector<8x128xf32>
    %9 = arith.addf %6, %8 : vector<8x128xf32>
    %cst_5 = arith.constant dense<0.000000e+00> : vector<8xf32>
    %10 = vector.multi_reduction <add>, %9, %cst_5 [1] : vector<8x128xf32> to vector<8xf32>
    %11 = vector.shape_cast %10 : vector<8xf32> to vector<8x1xf32>
    %cst_6 = arith.constant 3.125000e-02 : f32
    %12 = vector.broadcast %cst_6 : f32 to vector<8x1xf32>
    %13 = arith.mulf %11, %12 : vector<8x1xf32>
    %14 = vector.broadcast %13 : vector<8x1xf32> to vector<8x128xf32>
    %15 = arith.subf %9, %14 : vector<8x128xf32>
    %cst_7 = arith.constant 0.000000e+00 : f32
    %16 = vector.shape_cast %2 : vector<1x128xi1> to vector<1x128xi1>
    %17 = vector.broadcast %16 : vector<1x128xi1> to vector<8x128xi1>
    %18 = vector.broadcast %cst_7 : f32 to vector<8x128xf32>
    %19 = arith.select %17, %15, %18 : vector<8x128xi1>, vector<8x128xf32>
    %20 = arith.mulf %19, %19 : vector<8x128xf32>
    %cst_8 = arith.constant dense<0.000000e+00> : vector<8xf32>
    %21 = vector.multi_reduction <add>, %20, %cst_8 [1] : vector<8x128xf32> to vector<8xf32>
    %22 = vector.shape_cast %21 : vector<8xf32> to vector<8x1xf32>
    %cst_9 = arith.constant 3.125000e-02 : f32
    %23 = vector.broadcast %cst_9 : f32 to vector<8x1xf32>
    %24 = arith.mulf %22, %23 : vector<8x1xf32>
    %cst_10 = arith.constant 9.99999974E-6 : f32
    %25 = vector.broadcast %cst_10 : f32 to vector<8x1xf32>
    %26 = arith.addf %24, %25 : vector<8x1xf32>
    %27 = math.rsqrt %26 : vector<8x1xf32>
    %28 = vector.broadcast %27 : vector<8x1xf32> to vector<8x128xf32>
    %29 = arith.mulf %19, %28 : vector<8x128xf32>
    %cst_11 = arith.constant 0.000000e+00 : f32
    %30 = vector.broadcast %cst_11 : f32 to vector<8x128xf32>
    %31 = arith.maximumf %29, %30 : vector<8x128xf32>
    %32 = arith.truncf %31 : vector<8x128xf32> to vector<8x128xbf16>
    %c0_12 = arith.constant 0 : index
    %c0_13 = arith.constant 0 : index
    %33 = vector.load %arg4[%c0_12, %c0_13] : memref<128x128xbf16, #tpu.memory_space<vmem>>, vector<128x128xbf16>
    %cst_14 = arith.constant dense<0.000000e+00> : vector<8x128xf32>
    %34 = tpu.matmul %32, %33, %cst_14 {dimension_numbers = #tpu.dot_dimension_numbers<[1], [0], [0], [1], [0, 0, 1, 1], [], []>} : vector<8x128xbf16>, vector<128x128xbf16>, vector<8x128xf32> -> vector<8x128xf32>
    %c0_15 = arith.constant 0 : index
    %c0_16 = arith.constant 0 : index
    %35 = vector.load %arg5[%c0_15, %c0_16] : memref<1x128xf32, #tpu.memory_space<vmem>>, vector<1x128xf32>
    %36 = vector.broadcast %35 : vector<1x128xf32> to vector<8x128xf32>
    %37 = arith.addf %34, %36 : vector<8x128xf32>
    %cst_17 = arith.constant dense<0.000000e+00> : vector<8xf32>
    %38 = vector.multi_reduction <add>, %37, %cst_17 [1] : vector<8x128xf32> to vector<8xf32>
    %39 = vector.shape_cast %38 : vector<8xf32> to vector<8x1xf32>
    %cst_18 = arith.constant 3.125000e-02 : f32
    %40 = vector.broadcast %cst_18 : f32 to vector<8x1xf32>
    %41 = arith.mulf %39, %40 : vector<8x1xf32>
    %42 = vector.broadcast %41 : vector<8x1xf32> to vector<8x128xf32>
    %43 = arith.subf %37, %42 : vector<8x128xf32>
    %cst_19 = arith.constant 0.000000e+00 : f32
    %44 = vector.shape_cast %2 : vector<1x128xi1> to vector<1x128xi1>
    %45 = vector.broadcast %44 : vector<1x128xi1> to vector<8x128xi1>
    %46 = vector.broadcast %cst_19 : f32 to vector<8x128xf32>
    %47 = arith.select %45, %43, %46 : vector<8x128xi1>, vector<8x128xf32>
    %48 = arith.mulf %47, %47 : vector<8x128xf32>
    %cst_20 = arith.constant dense<0.000000e+00> : vector<8xf32>
    %49 = vector.multi_reduction <add>, %48, %cst_20 [1] : vector<8x128xf32> to vector<8xf32>
    %50 = vector.shape_cast %49 : vector<8xf32> to vector<8x1xf32>
    %cst_21 = arith.constant 3.125000e-02 : f32
    %51 = vector.broadcast %cst_21 : f32 to vector<8x1xf32>
    %52 = arith.mulf %50, %51 : vector<8x1xf32>
    %cst_22 = arith.constant 9.99999974E-6 : f32
    %53 = vector.broadcast %cst_22 : f32 to vector<8x1xf32>
    %54 = arith.addf %52, %53 : vector<8x1xf32>
    %55 = math.rsqrt %54 : vector<8x1xf32>
    %56 = vector.broadcast %55 : vector<8x1xf32> to vector<8x128xf32>
    %57 = arith.mulf %47, %56 : vector<8x128xf32>
    %cst_23 = arith.constant 0.000000e+00 : f32
    %58 = vector.broadcast %cst_23 : f32 to vector<8x128xf32>
    %59 = arith.maximumf %57, %58 : vector<8x128xf32>
    %60 = arith.truncf %59 : vector<8x128xf32> to vector<8x128xbf16>
    %c0_24 = arith.constant 0 : index
    %c0_25 = arith.constant 0 : index
    %61 = vector.load %arg6[%c0_24, %c0_25] : memref<128x16xbf16, #tpu.memory_space<vmem>>, vector<128x16xbf16>
    %cst_26 = arith.constant dense<0.000000e+00> : vector<8x16xf32>
    %62 = tpu.matmul %60, %61, %cst_26 {dimension_numbers = #tpu.dot_dimension_numbers<[1], [0], [0], [1], [0, 0, 1, 1], [], []>} : vector<8x128xbf16>, vector<128x16xbf16>, vector<8x16xf32> -> vector<8x16xf32>
    %c0_27 = arith.constant 0 : index
    %c0_28 = arith.constant 0 : index
    %63 = vector.load %arg7[%c0_27, %c0_28] : memref<1x16xf32, #tpu.memory_space<vmem>>, vector<1x16xf32>
    %64 = vector.broadcast %63 : vector<1x16xf32> to vector<8x16xf32>
    %65 = arith.addf %62, %64 : vector<8x16xf32>
    %c0_29 = arith.constant 0 : index
    %c0_30 = arith.constant 0 : index
    %66 = vector.load %arg8[%c0_29, %c0_30] : memref<8x16xf32, #tpu.memory_space<vmem>>, vector<8x16xf32>
    tpu.vector_store %arg8[%c0_29, %c0_30], %65 {strides = array<i32>} : memref<8x16xf32, #tpu.memory_space<vmem>>, vector<8x16xf32>,
    return
  }
  func.func @transform_0(%arg0: i32) -> (i32, i32) {
    %c0_i32 = arith.constant 0 : i32
    %c0_i32_0 = arith.constant 0 : i32
    return %arg0, %c0_i32 : i32, i32
  }
  func.func @transform_1(%arg0: i32) -> (i32, i32) {
    %c0_i32 = arith.constant 0 : i32
    %c0_i32_0 = arith.constant 0 : i32
    %c0_i32_1 = arith.constant 0 : i32
    return %c0_i32, %c0_i32_0 : i32, i32
  }
  func.func @transform_2(%arg0: i32) -> (i32, i32) {
    %c0_i32 = arith.constant 0 : i32
    %c0_i32_0 = arith.constant 0 : i32
    %c0_i32_1 = arith.constant 0 : i32
    return %c0_i32, %c0_i32_0 : i32, i32
  }
  func.func @transform_3(%arg0: i32) -> (i32, i32) {
    %c0_i32 = arith.constant 0 : i32
    %c0_i32_0 = arith.constant 0 : i32
    %c0_i32_1 = arith.constant 0 : i32
    return %c0_i32, %c0_i32_0 : i32, i32
  }
  func.func @transform_4(%arg0: i32) -> (i32, i32) {
    %c0_i32 = arith.constant 0 : i32
    %c0_i32_0 = arith.constant 0 : i32
    %c0_i32_1 = arith.constant 0 : i32
    return %c0_i32, %c0_i32_0 : i32, i32
  }
  func.func @transform_5(%arg0: i32) -> (i32, i32) {
    %c0_i32 = arith.constant 0 : i32
    %c0_i32_0 = arith.constant 0 : i32
    %c0_i32_1 = arith.constant 0 : i32
    return %c0_i32, %c0_i32_0 : i32, i32
  }
  func.func @transform_6(%arg0: i32) -> (i32, i32) {
    %c0_i32 = arith.constant 0 : i32
    %c0_i32_0 = arith.constant 0 : i32
    %c0_i32_1 = arith.constant 0 : i32
    return %c0_i32, %c0_i32_0 : i32, i32
  }
  func.func @transform_7(%arg0: i32) -> (i32, i32) {
    %c0_i32 = arith.constant 0 : i32
    %c0_i32_0 = arith.constant 0 : i32
    return %arg0, %c0_i32 : i32, i32
  }
}

module attributes {stable_mosaic.version = 11 : i64} {
  func.func @mlp_instnorm_kernel(%arg0: i32, %arg1: memref<8x1280xf32, #tpu.memory_space<vmem>>, %arg2: memref<1280x128xbf16, #tpu.memory_space<vmem>>, %arg3: memref<1x128xf32, #tpu.memory_space<vmem>>, %arg4: memref<128x128xbf16, #tpu.memory_space<vmem>>, %arg5: memref<1x128xf32, #tpu.memory_space<vmem>>, %arg6: memref<128x16xbf16, #tpu.memory_space<vmem>>, %arg7: memref<1x16xf32, #tpu.memory_space<vmem>>, %arg8: memref<8x16xf32, #tpu.memory_space<vmem>>) attributes {dimension_semantics = [#tpu.dimension_semantics<parallel>], iteration_bounds = array<i64: 4>, scalar_prefetch = 0 : i64, scratch_operands = 0 : i64, tpu.core_type = #tpu.core_type<tc>, window_params = [{transform_indices = @transform_0, window_bounds = array<i64: 8, 1280>}, {pipeline_mode = #tpu.pipeline_mode<synchronous>, transform_indices = @transform_1, window_bounds = array<i64: 1280, 128>}, {pipeline_mode = #tpu.pipeline_mode<synchronous>, transform_indices = @transform_2, window_bounds = array<i64: 1, 128>}, {pipeline_mode = #tpu.pipeline_mode<synchronous>, transform_indices = @transform_3, window_bounds = array<i64: 128, 128>}, {pipeline_mode = #tpu.pipeline_mode<synchronous>, transform_indices = @transform_4, window_bounds = array<i64: 1, 128>}, {pipeline_mode = #tpu.pipeline_mode<synchronous>, transform_indices = @transform_5, window_bounds = array<i64: 128, 16>}, {pipeline_mode = #tpu.pipeline_mode<synchronous>, transform_indices = @transform_6, window_bounds = array<i64: 1, 16>}, {transform_indices = @transform_7, window_bounds = array<i64: 8, 16>}]} {
    %0 = tpu.iota {dimensions = array<i32: 1>} : vector<1x128xi32>
    %c32_i32 = arith.constant 32 : i32
    %1 = vector.broadcast %c32_i32 : i32 to vector<1x128xi32>
    %2 = arith.cmpi slt, %0, %1 : vector<1x128xi32>
    %c0 = arith.constant 0 : index
    %c0_0 = arith.constant 0 : index
    %3 = vector.load %arg1[%c0, %c0_0] : memref<8x1280xf32, #tpu.memory_space<vmem>>, vector<8x1280xf32>
    %4 = arith.truncf %3 : vector<8x1280xf32> to vector<8x1280xbf16>
    %c0_1 = arith.constant 0 : index
    %c0_2 = arith.constant 0 : index
    %5 = vector.load %arg2[%c0_1, %c0_2] : memref<1280x128xbf16, #tpu.memory_space<vmem>>, vector<1280x128xbf16>
    %cst = arith.constant dense<0.000000e+00> : vector<8x128xf32>
    %6 = tpu.matmul %4, %5, %cst {dimension_numbers = #tpu.dot_dimension_numbers<[1], [0], [0], [1], [0, 0, 1, 1], [], []>} : vector<8x1280xbf16>, vector<1280x128xbf16>, vector<8x128xf32> -> vector<8x128xf32>
    %c0_3 = arith.constant 0 : index
    %c0_4 = arith.constant 0 : index
    %7 = vector.load %arg3[%c0_3, %c0_4] : memref<1x128xf32, #tpu.memory_space<vmem>>, vector<1x128xf32>
    %8 = vector.broadcast %7 : vector<1x128xf32> to vector<8x128xf32>
    %9 = arith.addf %6, %8 : vector<8x128xf32>
    %cst_5 = arith.constant dense<0.000000e+00> : vector<8xf32>
    %10 = vector.multi_reduction <add>, %9, %cst_5 [1] : vector<8x128xf32> to vector<8xf32>
    %11 = vector.shape_cast %10 : vector<8xf32> to vector<8x1xf32>
    %cst_6 = arith.constant 3.125000e-02 : f32
    %12 = vector.broadcast %cst_6 : f32 to vector<8x1xf32>
    %13 = arith.mulf %11, %12 : vector<8x1xf32>
    %14 = vector.broadcast %13 : vector<8x1xf32> to vector<8x128xf32>
    %15 = arith.subf %9, %14 : vector<8x128xf32>
    %cst_7 = arith.constant 0.000000e+00 : f32
    %16 = vector.shape_cast %2 : vector<1x128xi1> to vector<1x128xi1>
    %17 = vector.broadcast %16 : vector<1x128xi1> to vector<8x128xi1>
    %18 = vector.broadcast %cst_7 : f32 to vector<8x128xf32>
    %19 = arith.select %17, %15, %18 : vector<8x128xi1>, vector<8x128xf32>
    %20 = arith.mulf %19, %19 : vector<8x128xf32>
    %cst_8 = arith.constant dense<0.000000e+00> : vector<8xf32>
    %21 = vector.multi_reduction <add>, %20, %cst_8 [1] : vector<8x128xf32> to vector<8xf32>
    %22 = vector.shape_cast %21 : vector<8xf32> to vector<8x1xf32>
    %cst_9 = arith.constant 3.125000e-02 : f32
    %23 = vector.broadcast %cst_9 : f32 to vector<8x1xf32>
    %24 = arith.mulf %22, %23 : vector<8x1xf32>
    %cst_10 = arith.constant 9.99999974E-6 : f32
    %25 = vector.broadcast %cst_10 : f32 to vector<8x1xf32>
    %26 = arith.addf %24, %25 : vector<8x1xf32>
    %27 = math.rsqrt %26 : vector<8x1xf32>
    %28 = vector.broadcast %27 : vector<8x1xf32> to vector<8x128xf32>
    %29 = arith.mulf %19, %28 : vector<8x128xf32>
    %cst_11 = arith.constant 0.000000e+00 : f32
    %30 = vector.broadcast %cst_11 : f32 to vector<8x128xf32>
    %31 = arith.maximumf %29, %30 : vector<8x128xf32>
    %32 = arith.truncf %31 : vector<8x128xf32> to vector<8x128xbf16>
    %c0_12 = arith.constant 0 : index
    %c0_13 = arith.constant 0 : index
    %33 = vector.load %arg4[%c0_12, %c0_13] : memref<128x128xbf16, #tpu.memory_space<vmem>>, vector<128x128xbf16>
    %cst_14 = arith.constant dense<0.000000e+00> : vector<8x128xf32>
    %34 = tpu.matmul %32, %33, %cst_14 {dimension_numbers = #tpu.dot_dimension_numbers<[1], [0], [0], [1], [0, 0, 1, 1], [], []>} : vector<8x128xbf16>, vector<128x128xbf16>, vector<8x128xf32> -> vector<8x128xf32>
    %c0_15 = arith.constant 0 : index
    %c0_16 = arith.constant 0 : index
    %35 = vector.load %arg5[%c0_15, %c0_16] : memref<1x128xf32, #tpu.memory_space<vmem>>, vector<1x128xf32>
    %36 = vector.broadcast %35 : vector<1x128xf32> to vector<8x128xf32>
    %37 = arith.addf %34, %36 : vector<8x128xf32>
    %cst_17 = arith.constant dense<0.000000e+00> : vector<8xf32>
    %38 = vector.multi_reduction <add>, %37, %cst_17 [1] : vector<8x128xf32> to vector<8xf32>
    %39 = vector.shape_cast %38 : vector<8xf32> to vector<8x1xf32>
    %cst_18 = arith.constant 3.125000e-02 : f32
    %40 = vector.broadcast %cst_18 : f32 to vector<8x1xf32>
    %41 = arith.mulf %39, %40 : vector<8x1xf32>
    %42 = vector.broadcast %41 : vector<8x1xf32> to vector<8x128xf32>
    %43 = arith.subf %37, %42 : vector<8x128xf32>
    %cst_19 = arith.constant 0.000000e+00 : f32
    %44 = vector.shape_cast %2 : vector<1x128xi1> to vector<1x128xi1>
    %45 = vector.broadcast %44 : vector<1x128xi1> to vector<8x128xi1>
    %46 = vector.broadcast %cst_19 : f32 to vector<8x128xf32>
    %47 = arith.select %45, %43, %46 : vector<8x128xi1>, vector<8x128xf32>
    %48 = arith.mulf %47, %47 : vector<8x128xf32>
    %cst_20 = arith.constant dense<0.000000e+00> : vector<8xf32>
    %49 = vector.multi_reduction <add>, %48, %cst_20 [1] : vector<8x128xf32> to vector<8xf32>
    %50 = vector.shape_cast %49 : vector<8xf32> to vector<8x1xf32>
    %cst_21 = arith.constant 3.125000e-02 : f32
    %51 = vector.broadcast %cst_21 : f32 to vector<8x1xf32>
    %52 = arith.mulf %50, %51 : vector<8x1xf32>
    %cst_22 = arith.constant 9.99999974E-6 : f32
    %53 = vector.broadcast %cst_22 : f32 to vector<8x1xf32>
    %54 = arith.addf %52, %53 : vector<8x1xf32>
    %55 = math.rsqrt %54 : vector<8x1xf32>
    %56 = vector.broadcast %55 : vector<8x1xf32> to vector<8x128xf32>
    %57 = arith.mulf %47, %56 : vector<8x128xf32>
    %cst_23 = arith.constant 0.000000e+00 : f32
    %58 = vector.broadcast %cst_23 : f32 to vector<8x128xf32>
    %59 = arith.maximumf %57, %58 : vector<8x128xf32>
    %60 = arith.truncf %59 : vector<8x128xf32> to vector<8x128xbf16>
    %c0_24 = arith.constant 0 : index
    %c0_25 = arith.constant 0 : index
    %61 = vector.load %arg6[%c0_24, %c0_25] : memref<128x16xbf16, #tpu.memory_space<vmem>>, vector<128x16xbf16>
    %cst_26 = arith.constant dense<0.000000e+00> : vector<8x16xf32>
    %62 = tpu.matmul %60, %61, %cst_26 {dimension_numbers = #tpu.dot_dimension_numbers<[1], [0], [0], [1], [0, 0, 1, 1], [], []>} : vector<8x128xbf16>, vector<128x16xbf16>, vector<8x16xf32> -> vector<8x16xf32>
    %c0_27 = arith.constant 0 : index
    %c0_28 = arith.constant 0 : index
    %63 = vector.load %arg7[%c0_27, %c0_28] : memref<1x16xf32, #tpu.memory_space<vmem>>, vector<1x16xf32>
    %64 = vector.broadcast %63 : vector<1x16xf32> to vector<8x16xf32>
    %65 = arith.addf %62, %64 : vector<8x16xf32>
    %c0_29 = arith.constant 0 : index
    %c0_30 = arith.constant 0 : index
    %66 = vector.load %arg8[%c0_29, %c0_30] : memref<8x16xf32, #tpu.memory_space<vmem>>, vector<8x16xf32>
    tpu.vector_store %arg8[%c0_29, %c0_30], %65 {strides = array<i32>} : memref<8x16xf32, #tpu.memory_space<vmem>>, vector<8x16xf32>,
    return
  }
  func.func @transform_0(%arg0: i32) -> (i32, i32) {
    %c0_i32 = arith.constant 0 : i32
    %c0_i32_0 = arith.constant 0 : i32
    return %arg0, %c0_i32 : i32, i32
  }
  func.func @transform_1(%arg0: i32) -> (i32, i32) {
    %c0_i32 = arith.constant 0 : i32
    %c0_i32_0 = arith.constant 0 : i32
    %c0_i32_1 = arith.constant 0 : i32
    return %c0_i32, %c0_i32_0 : i32, i32
  }
  func.func @transform_2(%arg0: i32) -> (i32, i32) {
    %c0_i32 = arith.constant 0 : i32
    %c0_i32_0 = arith.constant 0 : i32
    %c0_i32_1 = arith.constant 0 : i32
    return %c0_i32, %c0_i32_0 : i32, i32
  }
  func.func @transform_3(%arg0: i32) -> (i32, i32) {
    %c0_i32 = arith.constant 0 : i32
    %c0_i32_0 = arith.constant 0 : i32
    %c0_i32_1 = arith.constant 0 : i32
    return %c0_i32, %c0_i32_0 : i32, i32
  }
  func.func @transform_4(%arg0: i32) -> (i32, i32) {
    %c0_i32 = arith.constant 0 : i32
    %c0_i32_0 = arith.constant 0 : i32
    %c0_i32_1 = arith.constant 0 : i32
    return %c0_i32, %c0_i32_0 : i32, i32
  }
  func.func @transform_5(%arg0: i32) -> (i32, i32) {
    %c0_i32 = arith.constant 0 : i32
    %c0_i32_0 = arith.constant 0 : i32
    %c0_i32_1 = arith.constant 0 : i32
    return %c0_i32, %c0_i32_0 : i32, i32
  }
  func.func @transform_6(%arg0: i32) -> (i32, i32) {
    %c0_i32 = arith.constant 0 : i32
    %c0_i32_0 = arith.constant 0 : i32
    %c0_i32_1 = arith.constant 0 : i32
    return %c0_i32, %c0_i32_0 : i32, i32
  }
  func.func @transform_7(%arg0: i32) -> (i32, i32) {
    %c0_i32 = arith.constant 0 : i32
    %c0_i32_0 = arith.constant 0 : i32
    return %arg0, %c0_i32 : i32, i32
  }
}

</mosaic_0001>

<bundles_post_ra>
// kernel: instance_norm_mlp.1
= control target key start
LH: loop header
LB: loop body
LE: loop exit
PB: predicated region body
PF: predicated region fallthrough
CT: control target
= control target key end

     0   :  { %s2397_s0 = inlined_call_operand.hbm [shape: f32[32,1280], index: 0, kind: input, shape index: {}]   ;;  %s2398_s1 = inlined_call_operand.hbm [shape: bf16[1280,128], index: 1, kind: input, shape index: {}]   ;;  %s2399_s2 = inlined_call_operand.vmem [shape: f32[1,128], index: 2, kind: input, shape index: {}]   ;;  %s2400_s3 = inlined_call_operand.vmem [shape: bf16[128,128], index: 3, kind: input, shape index: {}]   ;;  %s2401_s4 = inlined_call_operand.vmem [shape: f32[1,128], index: 4, kind: input, shape index: {}]   ;;  %s2402_s5 = inlined_call_operand.vmem [shape: bf16[128,16], index: 5, kind: input, shape index: {}]   ;;  %s2403_s6 = inlined_call_operand.vmem [shape: f32[1,16], index: 6, kind: input, shape index: {}]   ;;  %s2404_s7 = inlined_call_operand.hbm [shape: f32[32,16], index: 7, kind: output, shape index: {}]  }
   0x1   :  { %2409 = sst [smem:[#allocation12_spill]] %s2398_s1 }
   0x2   :  { %12 = vsyncpa [#allocation3], 0 }
   0x3   :  { %14 = vsyncpa [#allocation3 + $0x1], 0 }
   0x4   :  { %15 = vsyncpa [#allocation6], 0 }
   0x5   :  { %16 = vsyncpa [#allocation4], 0 }
   0x6   :  { %18 = vsyncpa [#allocation4 + $0x1], 0  ;;  %s2143_s24 = smov 0   ;;  %s2145_s25 = smov 0  }
   0x7   :  { %s2147_s26 = smov 0   ;;  %s2149_s27 = smov 0  }
   0x8 LB: > { %s2164_s28 = sadd.s32 4294967295, %s2094_s27   ;;  %s1529_s29 = sadd.s32 4294967294, %s2094_s27   ;;  %s2094_s27 = sphi %s2149_s27, %s2429_s27   ;;  %s2090_s26 = sphi %s2147_s26, %s2428_s26   ;;  %s2086_s25 = sphi %s2145_s25, %s2427_s25   ;;  %s2082_s24 = sphi %s2143_s24, %s2426_s24  }
   0x9   : > { %p44_p0 = scmp.ne.s32.totalorder %s2086_s25, %s2082_s24  ;;  %p2405_p1 = scmp.eq.s32.totalorder %s2164_s28, 0 }
   0xa   : > { %p200_p3 = scmp.eq.s32.totalorder %s1529_s29, 3  ;;  %p1530_p5 = scmp.ge.s32.totalorder %s2094_s27, 1 }
   0xb   : > { %p2173_p4 = por %p2405_p1, %p44_p0  ;;  %p207_p7 = scmp.lt.s32.totalorder %s2094_s27, 5 }
   0xc   : > { %p2178_p6 = por %p200_p3, %p44_p0  ;;  %s2096_s10 = smov [#allocation5]  }
   0xd   : > { %s2410_s30 = scalar_select %p2173_p4, 1, 0 }
   0xe   : > { %s2411_s8 = scalar_select %p2178_p6, 1, 0 }
   0xf   : > { %p2183_p8 = pnand %p1530_p5, %p207_p7  ;;  %s219_s11 = sshll.u32 %s2096_s10, 4  ;;  %s220_s11 = int_to_ptr.vmem [resolvable:$true] %s219_s11 }
  0x10   : > { %s2196_s13 = sadd.s32 1, %s2094_s27   ;;  %s31_s14 = sadd.s32 1, %s2090_s26 }
  0x11   : > { %s2412_s9 = scalar_select %p2183_p8, 1, 0 }
  0x12   : > { %p1819_p9 = pneg %p2183_p8  ;;  %s28_s15 = ssub.s32 %s2094_s27, %s2196_s13 }
  0x13   : > { %s1983_s16 = scalar_lea.vmem %s220_s11, 10240  ;;  %p1991_p3 = scmp.lt.s32.totalorder %s220_s11, %s220_s11 }
  0x14   : > { %p2191_p10 = pnand %p1819_p9, %p2405_p1  ;;  %p1984_p12 = scmp.ne.s32.totalorder %s220_s11, %s1983_s16 }
  0x15   : > { %p1992_p5 = scmp.lt.s32.totalorder %s1983_s16, %s1983_s16 }
  0x16   : > { %p1974_p11 = pneg %p2191_p10 }
  0x17   : > { %p1993_p7 = por %p1992_p5, %p1991_p3 }
  0x18   : > { %p1986_p13 = pnand %p1984_p12, %p1974_p11 }
  0x1a   : > { %p1987_p0 = pneg %p1986_p13 }
  0x1c   : > { %p1994_p2 = pnand %p1993_p7, %p1987_p0 }
  0x1e   : > { %1997 = shalt.err (!%p1994_p2)
}
  0x1f   : > { %s2097_s17 = smov 64   ;;  %s2098_s18 = smov 4  }
  0x20   : > { %s2414_s1 = sld [smem:[#allocation12_spill]]  ;;  %p29_p9 = scmp.eq.s32.totalorder %s28_s15, 0 }
  0x21   : > { %p38_p11 = scmp.ne.s32.totalorder %s2090_s26, %s2086_s25  ;;  %p39_p12 = scmp.eq.s32.totalorder %s2094_s27, 0 }
  0x22   : > { %p1832_p2 = scmp.lt.s32.totalorder %s2094_s27, 4  ;;  %p2416_p0 = scmp.eq.s32.totalorder %s2164_s28, 3 }
  0x23   : > { %s2213_s21 = scalar_select %p29_p9, %s2090_s26, %s31_s14  }
  0x24   : > { %p40_p13 = por %p39_p12, %p38_p11  ;;  %p2217_p3 = por %p2416_p0, %p38_p11 }
  0x25   : > { %2415 = sst [smem:[#allocation11_spill]] %s2213_s21  ;;  %s248_s23 = sand.u32 1, %s2090_s26  }
  0x26   : > { %1822 = dma.hbm_to_vmem [thread:$0]  (!%p2191_p10), %s2414_s1, 10240, %s220_s11, [#allocation6], %s2097_s17, %s2097_s17, %s2098_s18  }
  0x27   : > { %s2417_s22 = scalar_select %p2217_p3, 1, 0 }
  0x28   : > { %s1809_s29 = smul.u32 1280, %s2094_s27  ;;  %p2223_p5 = pnand %p1832_p2, %p40_p13 }
  0x29   : > { %s1808_s10 = smul.u32 80, %s248_s23  ;;  %s249_s18 = scalar_lea.sflag [#allocation3], %s248_s23 }
  0x2a   : > { %s2230_s16 = scalar_lea.hbm %s2397_s0, %s1809_s29  ;;  %p2000_p7 = pneg %p2223_p5 }
  0x2b   : > { %s252_s14 = scalar_lea.vmem [#allocation2], %s1808_s10  ;;  %s1998_s19 = scalar_lea.hbm %s2230_s16, 1280 }
  0x2c   : > { %s260_s17 = sshll.u32 %s252_s14, 4  ;;  %p1999_p10 = scmp.ne.s32.totalorder %s2230_s16, %s1998_s19  ;;  %s261_s17 = int_to_ptr.vmem [resolvable:$true] %s260_s17 }
  0x2d   : > { %s2003_s11 = scalar_lea.hbm %s2397_s0, 5120  ;;  %p2004_p12 = scmp.lt.s32.totalorder %s2230_s16, %s2397_s0 }
  0x2e   : > { %p2001_p9 = pnand %p2000_p7, %p1999_p10  ;;  %p2005_p2 = scmp.lt.s32.totalorder %s2003_s11, %s1998_s19 }
  0x30   : > { %p2002_p11 = pneg %p2001_p9  ;;  %p2006_p13 = por %p2005_p2, %p2004_p12 }
  0x32   : > { %p2007_p0 = pnand %p2006_p13, %p2002_p11 }
  0x34   : > { %2010 = shalt.err (!%p2007_p0)
}
  0x35   : > { %s2011_s10 = scalar_lea.vmem %s261_s17, 1280  ;;  %s2099_s23 = smov [#allocation2]  }
  0x36   : > { %p2012_p1 = scmp.ne.s32.totalorder %s261_s17, %s2011_s10  ;;  %s2016_s14 = sshll.u32 %s2099_s23, 4  ;;  %s2017_s14 = int_to_ptr.vmem [resolvable:$false] %s2016_s14 }
  0x37   : > { %s2018_s21 = scalar_lea.vmem %s2017_s14, 2560  ;;  %p2019_p10 = scmp.lt.s32.totalorder %s261_s17, %s2017_s14 }
  0x38   : > { %p2014_p6 = pnand %p2012_p1, %p2000_p7  ;;  %p2020_p9 = scmp.lt.s32.totalorder %s2018_s21, %s2011_s10 }
  0x3a   : > { %p2015_p3 = pneg %p2014_p6  ;;  %p2021_p4 = por %p2020_p9, %p2019_p10 }
  0x3c   : > { %p2022_p8 = pnand %p2021_p4, %p2015_p3 }
  0x3e   : > { %2025 = shalt.err (!%p2022_p8)
}
  0x3f   : > { %1826 = dma.hbm_to_vmem [thread:$0]  (!%p2223_p5), %s2230_s16, 1280, %s261_s17, %s249_s18  }
  0x40   : > { %p2419_p11 = scmp.ne.s32.totalorder %s2412_s9, 0 }
  0x41   : > { %s2249_s1 = sand.u32 (!%p2419_p11), 1, %s2086_s25   ;;  %p2420_p1 = scmp.ne.s32.totalorder (!%p2419_p11), %s2410_s30, 0 }
  0x42   : > { %269 = sbr.rel (%p2419_p11) target bundleno = 1389 (0x56d), region = 48  ;;  %s272_s20 = scalar_lea.sflag (!%p2419_p11), [#allocation3], %s2249_s1 }
  0x43   : > { %s1810_s19 = smul.u32 (!%p2419_p11), 80, %s2249_s1 }
  0x45   : > { %s2253_s11 = scalar_lea.vmem (!%p2419_p11), [#allocation2], %s1810_s19 }
  0x47   : > { %2069 = dma.done.wait (%p2420_p1), %s272_s20, 1280  }
  0x48   : > { %2071 = vsyncadd (%p2420_p1), %s272_s20, 4294966016  ;;  %p2421_p4 = scmp.eq.s32.totalorder %s2164_s28, 0 }
  0x4a   : > { %2073 = dma.done.wait (%p2421_p4), [#allocation6], 10240   ;;  %p2422_p6 = pmov %p2421_p4 }
  0x4b   : > { %v1872_v0 = vld [vmem:[#allocation5 + $0x78] sm:$0xff]   ;;  %v1876_v4 = vld [vmem:[#allocation5 + $0x70] sm:$0xff]   ;;  %v1880_v8 = vld [vmem:[#allocation5 + $0x68] sm:$0xff]   ;;  %vm2101_vm1 = vmmov 0   ;;  %s1536_s18 = sshll.u32 %s2249_s1, 3  ;;  %s1637_s10 = sshll.u32 %s2164_s28, 7 }
  0x4c   : > { %2075 = vsyncadd (%p2422_p6), [#allocation6], 4294957056  ;;  %v1873_v1 = vld [vmem:[#allocation5 + $0x38] sm:$0xff]   ;;  %1640 = vmatprep.subr.bf16.mxu0 %v1872_v0  ;;  %v1877_v5 = vld [vmem:[#allocation5 + $0x30] sm:$0xff]   ;;  %s309_s23 = scalar_lea.vmem [#allocation7], %s1536_s18  ;;  %vm1433_vm2 = vcmask 130048  }
  0x4d   : > { %v1874_v2 = vld [vmem:[#allocation5 + $0xf8] sm:$0xff]   ;;  %1641 = vmatpush3.bf16.msra.mxu0 %v1873_v1  ;;  %v1878_v6 = vld [vmem:[#allocation5 + $0xf0] sm:$0xff]   ;;  %v1881_v9 = vld [vmem:[#allocation5 + $0x28] sm:$0xff]   ;;  %s1449_s14 = sshll.u32 %s309_s23, 4  ;;  %s1436_s30 = scalar_lea.sflag [#allocation4], %s2249_s1  ;;  %s2357_s14 = int_to_ptr.vmem [resolvable:$true] %s1449_s14 }
  0x4e   : > { %v1875_v3 = vld [vmem:[#allocation5 + $0xb8] sm:$0xff]   ;;  %1662 = vmatprep.subr.bf16.mxu1 %v1874_v2  ;;  %1642 = vmatprep.subr.bf16.mxu0 %v1876_v4  ;;  %v1879_v7 = vld [vmem:[#allocation5 + $0xb0] sm:$0xff]   ;;  %v1882_v10 = vld [vmem:[#allocation5 + $0xe8] sm:$0xff]   ;;  %s2026_s28 = scalar_lea.vmem %s2357_s14, 128  ;;  %p2423_p3 = scmp.ne.s32.totalorder %s2417_s22, 0 }
  0x4f   : > { %1663 = vmatpush3.bf16.msra.mxu1 %v1875_v3  ;;  %v1883_v11 = vld [vmem:[#allocation5 + $0xa8] sm:$0xff]   ;;  %v1884_v12 = vld [vmem:[#allocation5 + $0x60] sm:$0xff]   ;;  %v1888_v16 = vld [vmem:[#allocation5 + $0x58] sm:$0xff]   ;;  %p2027_p8 = scmp.ne.s32.totalorder %s2357_s14, %s2026_s28  ;;  %s2102_s9 = smov [#allocation7]  }
  0x50   : > { %1664 = vmatprep.subr.bf16.mxu1 %v1878_v6  ;;  %v1885_v13 = vld [vmem:[#allocation5 + $0x20] sm:$0xff]   ;;  %v1889_v17 = vld [vmem:[#allocation5 + $0x18] sm:$0xff]   ;;  %v1892_v20 = vld [vmem:[#allocation5 + $0x50] sm:$0xff]   ;;  %s2030_s21 = sshll.u32 %s2102_s9, 4  ;;  %s2031_s21 = int_to_ptr.vmem [resolvable:$false] %s2030_s21 }
  0x51   : > { %1643 = vmatpush3.bf16.msra.mxu0 %v1877_v5  ;;  %v1886_v14 = vld [vmem:[#allocation5 + $0xe0] sm:$0xff]   ;;  %v1890_v18 = vld [vmem:[#allocation5 + $0xd8] sm:$0xff]   ;;  %v1893_v21 = vld [vmem:[#allocation5 + $0x10] sm:$0xff]   ;;  %p2028_p5 = pnand %p2027_p8, %p2423_p3  ;;  %s2032_s12 = scalar_lea.vmem %s2031_s21, 256 }
  0x52   : > { %1644 = vmatprep.subr.bf16.mxu0 %v1880_v8  ;;  %v1887_v15 = vld [vmem:[#allocation5 + $0xa0] sm:$0xff]   ;;  %v1891_v19 = vld [vmem:[#allocation5 + $0x98] sm:$0xff]   ;;  %v1894_v22 = vld [vmem:[#allocation5 + $0xd0] sm:$0xff]   ;;  %p2033_p12 = scmp.lt.s32.totalorder %s2357_s14, %s2031_s21  ;;  %p2034_p2 = scmp.lt.s32.totalorder %s2032_s12, %s2026_s28 }
  0x53   : > { %1665 = vmatpush3.bf16.msra.mxu1 %v1879_v7  ;;  %v1895_v23 = vld [vmem:[#allocation5 + $0x90] sm:$0xff]   ;;  %v1896_v24 = vld [vmem:[#allocation5 + $0x48] sm:$0xff]   ;;  %v1900_v28 = vld [vmem:[#allocation5 + $0x40] sm:$0xff]   ;;  %p2029_p7 = pneg %p2028_p5 }
  0x54   : > { %1666 = vmatprep.subr.bf16.mxu1 %v1882_v10  ;;  %v1897_v25 = vld [vmem:[#allocation5 + $0x8] sm:$0xff]   ;;  %v1901_v29 = vld [vmem:[#allocation5] sm:$0xff]   ;;  %v1904_v36 = vld [vmem:[#allocation5 + $0x178] sm:$0xff]   ;;  %p2035_p13 = por %p2034_p2, %p2033_p12 }
  0x55   : > { %1645 = vmatpush3.bf16.msra.mxu0 %v1881_v9  ;;  %v1898_v26 = vld [vmem:[#allocation5 + $0xc8] sm:$0xff]   ;;  %v1902_v30 = vld [vmem:[#allocation5 + $0xc0] sm:$0xff]   ;;  %v1905_v39 = vld [vmem:[#allocation5 + $0x138] sm:$0xff]  }
  0x56   : > { %1646 = vmatprep.subr.bf16.mxu0 %v1884_v12  ;;  %v1899_v27 = vld [vmem:[#allocation5 + $0x88] sm:$0xff]   ;;  %v1903_v33 = vld [vmem:[#allocation5 + $0x80] sm:$0xff]   ;;  %v1906_v42 = vld [vmem:[#allocation5 + $0x1f8] sm:$0xff]   ;;  %p2036_p0 = pnand %p2035_p13, %p2029_p7 }
  0x57   : > { %1667 = vmatpush3.bf16.msra.mxu1 %v1883_v11  ;;  %v315_v31 = vld [vmem:[%s2253_s11 + $0x8] sm:$0xff]  ;;  %v314_v34 = vld [vmem:[%s2253_s11] sm:$0xff]  ;;  %v317_v37 = vld [vmem:[%s2253_s11 + $0x18] sm:$0xff] }
  0x58   : > { %1668 = vmatprep.subr.bf16.mxu1 %v1886_v14  ;;  %v325_v32 = vpack.c.bf16 %v315_v31, %v315_v31  ;;  %v324_v35 = vpack.c.bf16 %v314_v34, %v314_v34  ;;  %v327_v38 = vpack.c.bf16 %v317_v37, %v317_v37  ;;  %v316_v40 = vld [vmem:[%s2253_s11 + $0x10] sm:$0xff]  ;;  %v1907_v43 = vld [vmem:[#allocation5 + $0x1b8] sm:$0xff]   ;;  %v1912_v48 = vld [vmem:[#allocation5 + $0x168] sm:$0xff]  }
  0x59   : > { %1647 = vmatpush3.bf16.msra.mxu0 %v1885_v13  ;;  %v326_v41 = vpack.c.bf16 %v316_v40, %v316_v40  ;;  %v1908_v44 = vld [vmem:[#allocation5 + $0x170] sm:$0xff]   ;;  %v1913_v49 = vld [vmem:[#allocation5 + $0x128] sm:$0xff]   ;;  %v1916_v52 = vld [vmem:[#allocation5 + $0x160] sm:$0xff]  }
  0x5a   : > { %1648 = vmatprep.subr.bf16.mxu0 %v1888_v16  ;;  %1013 = vmatprep.mubr.bf16.mxu0 %v325_v32  ;;  %v1909_v45 = vld [vmem:[#allocation5 + $0x130] sm:$0xff]   ;;  %v1914_v50 = vld [vmem:[#allocation5 + $0x1e8] sm:$0xff]   ;;  %v1917_v53 = vld [vmem:[#allocation5 + $0x120] sm:$0xff]  }
  0x5b   : > { %1669 = vmatpush3.bf16.msra.mxu1 %v1887_v15  ;;  %1053 = vmatprep.mubr.bf16.mxu1 %v327_v38  ;;  %v1910_v46 = vld [vmem:[#allocation5 + $0x1f0] sm:$0xff]   ;;  %v1915_v51 = vld [vmem:[#allocation5 + $0x1a8] sm:$0xff]   ;;  %v1918_v54 = vld [vmem:[#allocation5 + $0x1e0] sm:$0xff]  }
  0x5c   : > { %1670 = vmatprep.subr.bf16.mxu1 %v1890_v18  ;;  %v1911_v47 = vld [vmem:[#allocation5 + $0x1b0] sm:$0xff]   ;;  %v1919_v55 = vld [vmem:[#allocation5 + $0x1a0] sm:$0xff]   ;;  %v1920_v56 = vld [vmem:[#allocation5 + $0x158] sm:$0xff]  }
  0x5d   : > { %1649 = vmatpush3.bf16.msra.mxu0 %v1889_v17  ;;  %v1921_v57 = vld [vmem:[#allocation5 + $0x118] sm:$0xff]   ;;  %v1924_v60 = vld [vmem:[#allocation5 + $0x150] sm:$0xff]   ;;  %v1928_v0 = vld [vmem:[#allocation5 + $0x148] sm:$0xff]  }
  0x5e   : > { %1650 = vmatprep.subr.bf16.mxu0 %v1892_v20  ;;  %v1922_v58 = vld [vmem:[#allocation5 + $0x1d8] sm:$0xff]   ;;  %v1925_v61 = vld [vmem:[#allocation5 + $0x110] sm:$0xff]   ;;  %v1929_v1 = vld [vmem:[#allocation5 + $0x108] sm:$0xff]  }
  0x5f   : > { %1671 = vmatpush3.bf16.msra.mxu1 %v1891_v19  ;;  %v1923_v59 = vld [vmem:[#allocation5 + $0x198] sm:$0xff]   ;;  %v1926_v62 = vld [vmem:[#allocation5 + $0x1d0] sm:$0xff]   ;;  %v1930_v2 = vld [vmem:[#allocation5 + $0x1c8] sm:$0xff]  }
  0x60   : > { %1672 = vmatprep.subr.bf16.mxu1 %v1894_v22  ;;  %v1927_v63 = vld [vmem:[#allocation5 + $0x190] sm:$0xff]   ;;  %v1931_v3 = vld [vmem:[#allocation5 + $0x188] sm:$0xff]   ;;  %v1932_v4 = vld [vmem:[#allocation5 + $0x140] sm:$0xff]  }
  0x61   : > { %1651 = vmatpush3.bf16.msra.mxu0 %v1893_v21  ;;  %v1933_v5 = vld [vmem:[#allocation5 + $0x100] sm:$0xff]   ;;  %v319_v7 = vld [vmem:[%s2253_s11 + $0x28] sm:$0xff]  ;;  %v321_v13 = vld [vmem:[%s2253_s11 + $0x38] sm:$0xff] }
  0x62   : > { %1652 = vmatprep.subr.bf16.mxu0 %v1896_v24  ;;  %v1934_v6 = vld [vmem:[#allocation5 + $0x1c0] sm:$0xff]   ;;  %v329_v8 = vpack.c.bf16 %v319_v7, %v319_v7  ;;  %v1936_v12 = vld [vmem:[#allocation5 + $0x278] sm:$0xff]   ;;  %v331_v14 = vpack.c.bf16 %v321_v13, %v321_v13  ;;  %v1938_v18 = vld [vmem:[#allocation5 + $0x270] sm:$0xff]  }
  0x63   : > { %1673 = vmatpush3.bf16.msra.mxu1 %v1895_v23  ;;  %v1935_v9 = vld [vmem:[#allocation5 + $0x180] sm:$0xff]   ;;  %v1937_v15 = vld [vmem:[#allocation5 + $0x238] sm:$0xff]   ;;  %v1939_v19 = vld [vmem:[#allocation5 + $0x230] sm:$0xff]  }
  0x64   : > { %1674 = vmatprep.subr.bf16.mxu1 %v1898_v26  ;;  %v318_v10 = vld [vmem:[%s2253_s11 + $0x20] sm:$0xff]  ;;  %v320_v16 = vld [vmem:[%s2253_s11 + $0x30] sm:$0xff]  ;;  %v1940_v20 = vld [vmem:[#allocation5 + $0x268] sm:$0xff]  }
  0x65   : > { %1653 = vmatpush3.bf16.msra.mxu0 %v1897_v25  ;;  %v328_v11 = vpack.c.bf16 %v318_v10, %v318_v10  ;;  %v330_v17 = vpack.c.bf16 %v320_v16, %v320_v16  ;;  %v1941_v21 = vld [vmem:[#allocation5 + $0x228] sm:$0xff]   ;;  %v1942_v22 = vld [vmem:[#allocation5 + $0x260] sm:$0xff]   ;;  %v1944_v24 = vld [vmem:[#allocation5 + $0x258] sm:$0xff]  }
  0x66   : > { %1654 = vmatprep.subr.bf16.mxu0 %v1900_v28  ;;  %v1943_v23 = vld [vmem:[#allocation5 + $0x220] sm:$0xff]   ;;  %v1945_v25 = vld [vmem:[#allocation5 + $0x218] sm:$0xff]   ;;  %v1949_v31 = vld [vmem:[#allocation5 + $0x208] sm:$0xff]  }
  0x67   : > { %1675 = vmatpush3.bf16.msra.mxu1 %v1899_v27  ;;  %v323_v26 = vld [vmem:[%s2253_s11 + $0x48] sm:$0xff]  ;;  %v1946_v27 = vld [vmem:[#allocation5 + $0x250] sm:$0xff]   ;;  %v1950_v32 = vld [vmem:[#allocation5 + $0x240] sm:$0xff]  }
  0x68   : > { %1676 = vmatprep.subr.bf16.mxu1 %v1902_v30  ;;  %v333_v28 = vpack.c.bf16 %v323_v26, %v323_v26  ;;  %v1948_v30 = vld [vmem:[#allocation5 + $0x248] sm:$0xff]   ;;  %v322_v34 = vld [vmem:[%s2253_s11 + $0x40] sm:$0xff]  ;;  %s2355_s11 = scalar_lea.hbm %s2404_s7, %s1637_s10 }
  0x69   : > { %1655 = vmatpush3.bf16.msra.mxu0 %v1901_v29  ;;  %v1947_v29 = vld [vmem:[#allocation5 + $0x210] sm:$0xff]   ;;  %v1954_v13 = vld [vmem:[%s2400_s3 + $0x28] sm:$0xff]   ;;  %v1618_v26 = vld [vmem:[%s2401_s4] ss:$0 sm:$0xff] }
  0x6a   : > { %1684 = vmatprep.subr.bf16.mxu0 %v1904_v36  ;;  %v1957_v16 = vld [vmem:[%s2400_s3 + $0x10] sm:$0xff]  }
  0x6b   : > { %1677 = vmatpush3.bf16.msra.mxu1 %v1903_v33  ;;  %v1951_v33 = vld [vmem:[#allocation5 + $0x200] sm:$0xff]  }
  0x6c   : > { %1014 = vmatmul.mubr.bf16.vlgmr.msra.gmra.mxu0 %v324_v35  ;;  %1706 = vmatprep.subr.bf16.mxu1 %v1906_v42  ;;  %v332_v35 = vpack.c.bf16 %v322_v34, %v322_v34 }
  0x6d   : > { %1685 = vmatpush3.bf16.msra.mxu0 %v1905_v39  ;;  %1093 = vmatprep.mubr.bf16.mxu0 %v329_v8 }
  0x6e   : > { %1054 = vmatmul.mubr.bf16.vlgmr.msra.gmra.mxu1 %v326_v41  ;;  %1686 = vmatprep.subr.bf16.mxu0 %v1908_v44 }
  0x6f   : > { %1707 = vmatpush3.bf16.msra.mxu1 %v1907_v43  ;;  %1133 = vmatprep.mubr.bf16.mxu1 %v331_v14  ;;  %v1955_v14 = vld [vmem:[%s2400_s3 + $0x20] sm:$0xff]  }
  0x70   : > { %1708 = vmatprep.subr.bf16.mxu1 %v1910_v46 }
  0x71   : > { %1687 = vmatpush3.bf16.msra.mxu0 %v1909_v45 }
  0x72   : > { %1688 = vmatprep.subr.bf16.mxu0 %v1912_v48 }
  0x73   : > { %1709 = vmatpush3.bf16.msra.mxu1 %v1911_v47 }
  0x74   : > { %1710 = vmatprep.subr.bf16.mxu1 %v1914_v50 }
  0x75   : > { %1689 = vmatpush3.bf16.msra.mxu0 %v1913_v49 }
  0x76   : > { %1690 = vmatprep.subr.bf16.mxu0 %v1916_v52 }
  0x77   : > { %1711 = vmatpush3.bf16.msra.mxu1 %v1915_v51 }
  0x78   : > { %1712 = vmatprep.subr.bf16.mxu1 %v1918_v54 }
  0x79   : > { %1691 = vmatpush3.bf16.msra.mxu0 %v1917_v53  ;;  %v1537_v53 = vld [vmem:[%s2399_s2] ss:$0 sm:$0xff] }
  0x7a   : > { %1692 = vmatprep.subr.bf16.mxu0 %v1920_v56 }
  0x7b   : > { %1713 = vmatpush3.bf16.msra.mxu1 %v1919_v55 }
  0x7c   : > { %1714 = vmatprep.subr.bf16.mxu1 %v1922_v58 }
  0x7d   : > { %1693 = vmatpush3.bf16.msra.mxu0 %v1921_v57 }
  0x7e   : > { %1694 = vmatprep.subr.bf16.mxu0 %v1924_v60 }
  0x7f   : > { %1715 = vmatpush3.bf16.msra.mxu1 %v1923_v59 }
  0x80   : > { %1716 = vmatprep.subr.bf16.mxu1 %v1926_v62 }
  0x81   : > { %1695 = vmatpush3.bf16.msra.mxu0 %v1925_v61 }
  0x82   : > { %1696 = vmatprep.subr.bf16.mxu0 %v1928_v0 }
  0x83   : > { %1717 = vmatpush3.bf16.msra.mxu1 %v1927_v63 }
  0x84   : > { %1718 = vmatprep.subr.bf16.mxu1 %v1930_v2 }
  0x85   : > { %1697 = vmatpush3.bf16.msra.mxu0 %v1929_v1 }
  0x86   : > { %1698 = vmatprep.subr.bf16.mxu0 %v1932_v4  ;;  %v2100_v4 = vmov 0.0  }
  0x87   : > { %1719 = vmatpush3.bf16.msra.mxu1 %v1931_v3  ;;  %v1952_v3 = vld [vmem:[%s2400_s3 + $0x38] sm:$0xff]  }
  0x88   : > { %1720 = vmatprep.subr.bf16.mxu1 %v1934_v6  ;;  %v311_v6 = vlaneseq }
  0x89   : > { %1699 = vmatpush3.bf16.msra.mxu0 %v1933_v5  ;;  %v1953_v5 = vld [vmem:[%s2400_s3 + $0x30] sm:$0xff]  }
  0x8a   : > { %1728 = vmatprep.subr.bf16.mxu0 %v1936_v12  ;;  %v312_v7 = vand.u32 127, %v311_v6 }
  0x8b   : > { %1721 = vmatpush3.bf16.msra.mxu1 %v1935_v9 }
  0x8c   : > { %1094 = vmatmul.mubr.bf16.vlgmr.msra.gmra.mxu0 %v328_v11  ;;  %1768 = vmatprep.subr.bf16.mxu1 %v2100_v4  ;;  %vm313_vm0 = vcmp.lt.s32.totalorder %v312_v7, 32 }
  0x8d   : > { %1729 = vmatpush3.bf16.msra.mxu0 %v1937_v15  ;;  %1173 = vmatprep.mubr.bf16.mxu0 %v333_v28  ;;  %v1956_v15 = vld [vmem:[%s2400_s3 + $0x18] sm:$0xff]  }
  0x8e   : > { %1134 = vmatmul.mubr.bf16.vlgmr.msra.gmra.mxu1 %v330_v17  ;;  %1730 = vmatprep.subr.bf16.mxu0 %v1938_v18  ;;  %v1958_v17 = vld [vmem:[%s2400_s3 + $0x8] sm:$0xff]   ;;  %v1959_v18 = vld [vmem:[%s2400_s3] sm:$0xff]  }
  0x8f   : > { %1769 = vmatpush3.bf16.msra.mxu1 %v1952_v3  ;;  %1784 = vmatprep.mubr.msk.bf16.mxu1 %vm2101_vm1, %v2100_v4 }
  0x90   : > { %1770 = vmatprep.subr.bf16.mxu1 %v2100_v4 }
  0x91   : > { %1731 = vmatpush3.bf16.msra.mxu0 %v1939_v19 }
  0x92   : > { %1732 = vmatprep.subr.bf16.mxu0 %v1940_v20 }
  0x93   : > { %1771 = vmatpush3.bf16.msra.mxu1 %v1953_v5 }
  0x94   : > { %1772 = vmatprep.subr.bf16.mxu1 %v2100_v4 }
  0x95   : > { %1733 = vmatpush3.bf16.msra.mxu0 %v1941_v21 }
  0x96   : > { %1734 = vmatprep.subr.bf16.mxu0 %v1942_v22 }
  0x97   : > { %1773 = vmatpush3.bf16.msra.mxu1 %v1954_v13 }
  0x98   : > { %1774 = vmatprep.subr.bf16.mxu1 %v2100_v4 }
  0x99   : > { %1735 = vmatpush3.bf16.msra.mxu0 %v1943_v23 }
  0x9a   : > { %1736 = vmatprep.subr.bf16.mxu0 %v1944_v24 }
  0x9b   : > { %1775 = vmatpush3.bf16.msra.mxu1 %v1955_v14 }
  0x9c   : > { %1776 = vmatprep.subr.bf16.mxu1 %v2100_v4 }
  0x9d   : > { %1737 = vmatpush3.bf16.msra.mxu0 %v1945_v25 }
  0x9e   : > { %1738 = vmatprep.subr.bf16.mxu0 %v1946_v27 }
  0x9f   : > { %1777 = vmatpush3.bf16.msra.mxu1 %v1956_v15 }
  0xa0   : > { %1778 = vmatprep.subr.bf16.mxu1 %v2100_v4 }
  0xa1   : > { %1739 = vmatpush3.bf16.msra.mxu0 %v1947_v29 }
  0xa2   : > { %1740 = vmatprep.subr.bf16.mxu0 %v1948_v30 }
  0xa3   : > { %1779 = vmatpush3.bf16.msra.mxu1 %v1957_v16 }
  0xa4   : > { %1780 = vmatprep.subr.bf16.mxu1 %v2100_v4 }
  0xa5   : > { %1741 = vmatpush3.bf16.msra.mxu0 %v1949_v31 }
  0xa6   : > { %1742 = vmatprep.subr.bf16.mxu0 %v1950_v32  ;;  %v1960_v32 = vld [vmem:[%s2402_s5 + $0x38] sm:$0xff]  }
  0xa7   : > { %1781 = vmatpush3.bf16.msra.mxu1 %v1958_v17 }
  0xa8   : > { %1782 = vmatprep.subr.bf16.mxu1 %v2100_v4 }
  0xa9   : > { %1743 = vmatpush3.bf16.msra.mxu0 %v1951_v33  ;;  %v1961_v33 = vld [vmem:[%s2402_s5 + $0x30] sm:$0xff]  }
  0xaa   : > { %1788 = vmatprep.subr.bf16.mxu0 %v2100_v4 }
  0xab   : > { %1783 = vmatpush3.bf16.msra.mxu1 %v1959_v18 }
  0xac   : > { %1174 = vmatmul.mubr.bf16.vlgmr.msra.gmra.mxu0 %v332_v35 }
  0xad   : > { %1804 = vmatprep.mubr.msk.bf16.mxu0 %vm2101_vm1, %v2100_v4  ;;  %1789 = vmatpush3.bf16.msra.mxu0 %v1960_v32 }
  0xae   : > { %1790 = vmatprep.subr.bf16.mxu0 %v2100_v4 }
  0xb1   : > { %1791 = vmatpush3.bf16.msra.mxu0 %v1961_v33 }
  0xb2   : > { %1792 = vmatprep.subr.bf16.mxu0 %v2100_v4 }
 0x12c   : > { %v1656_v36 = vpop.f32.mrf.mxu0 }
 0x12e   : > { %v1657_v37 = vpop.f32.mrf.mxu0  ;;  %v1678_v38 = vpop.f32.mrf.mxu1 }
 0x12f   : > { %v1658_v52 = vadd.f32 %v1657_v37, %v1656_v36 }
 0x130   : > { %v1659_v39 = vpop.f32.mrf.mxu0  ;;  %v1679_v40 = vpop.f32.mrf.mxu1 }
 0x131   : > { %v1016_v54 = vadd.f32 %v1658_v52, %v1537_v53  ;;  %v1680_v55 = vadd.f32 %v1679_v40, %v1678_v38  ;;  %v1962_v39 = vld [vmem:[%s2402_s5 + $0x28] sm:$0xff]   ;;  %v1963_v40 = vld [vmem:[%s2402_s5 + $0x20] sm:$0xff]  }
 0x132   : > { %v1660_v41 = vpop.f32.mrf.mxu0  ;;  %v1681_v42 = vpop.f32.mrf.mxu1  ;;  %1793 = vmatpush3.bf16.msra.mxu0 %v1962_v39  ;;  %v1627_v52 = vld [vmem:[%s2403_s6] ss:$0 sm:$0xff] }
 0x133   : > { %v1056_v57 = vadd.f32 %v1680_v55, %v1016_v54  ;;  %1794 = vmatprep.subr.bf16.mxu0 %v2100_v4  ;;  %v1964_v41 = vld [vmem:[%s2402_s5 + $0x18] sm:$0xff]   ;;  %v1965_v42 = vld [vmem:[%s2402_s5 + $0x10] sm:$0xff]  }
 0x134   : > { %v1682_v43 = vpop.f32.mrf.mxu1 }
 0x135   : > { %v1966_v43 = vld [vmem:[%s2402_s5 + $0x8] sm:$0xff]  }
 0x136   : > { %1795 = vmatpush3.bf16.msra.mxu0 %v1963_v40 }
 0x137   : > { %1796 = vmatprep.subr.bf16.mxu0 %v2100_v4 }
 0x13a   : > { %1797 = vmatpush3.bf16.msra.mxu0 %v1964_v41 }
 0x13b   : > { %1798 = vmatprep.subr.bf16.mxu0 %v2100_v4 }
 0x13e   : > { %1799 = vmatpush3.bf16.msra.mxu0 %v1965_v42 }
 0x13f   : > { %1800 = vmatprep.subr.bf16.mxu0 %v2100_v4 }
 0x142   : > { %1801 = vmatpush3.bf16.msra.mxu0 %v1966_v43 }
 0x143   : > { %1802 = vmatprep.subr.bf16.mxu0 %v2100_v4 }
 0x14c   : > { %v1700_v44 = vpop.f32.mrf.mxu0 }
 0x14e   : > { %v1701_v45 = vpop.f32.mrf.mxu0  ;;  %v1722_v46 = vpop.f32.mrf.mxu1 }
 0x14f   : > { %v1702_v56 = vadd.f32 %v1701_v45, %v1700_v44  ;;  %v1967_v44 = vld [vmem:[%s2402_s5] sm:$0xff]  }
 0x150   : > { %v1703_v47 = vpop.f32.mrf.mxu0  ;;  %v1723_v48 = vpop.f32.mrf.mxu1  ;;  %1803 = vmatpush3.bf16.msra.mxu0 %v1967_v44 }
 0x151   : > { %v1096_v58 = vadd.f32 %v1702_v56, %v1056_v57  ;;  %v1724_v59 = vadd.f32 %v1723_v48, %v1722_v46 }
 0x152   : > { %v1704_v49 = vpop.f32.mrf.mxu0  ;;  %v1725_v50 = vpop.f32.mrf.mxu1 }
 0x153   : > { %v1136_v62 = vadd.f32 %v1724_v59, %v1096_v58 }
 0x154   : > { %v1726_v51 = vpop.f32.mrf.mxu1 }
 0x16c   : > { %v1744_v60 = vpop.f32.mrf.mxu0 }
 0x16e   : > { %v1745_v61 = vpop.f32.mrf.mxu0 }
 0x16f   : > { %v1746_v63 = vadd.f32 %v1745_v61, %v1744_v60 }
 0x170   : > { %v1747_v0 = vpop.f32.mrf.mxu0 }
 0x171   : > { %v1176_v1 = vadd.f32 %v1746_v63, %v1136_v62 }
 0x172   : > { %v1748_v2 = vpop.f32.mrf.mxu0 }
 0x173   : > { %1181 = vadd.xlane.f32.xlu0 %v1176_v1 }
 0x1fc   : > { %v1182_v8 = vpop.xlane.xlu0 %1181 }
 0x1fd   : > { %v1183_v9 = vmul.f32 0.03125, %v1182_v8 }
 0x1ff   : > { %v1184_v10 = vsub.f32 %v1176_v1, %v1183_v9 }
 0x201   : > { %v1187_v11 = vsel %vm313_vm0, %v1184_v10, 0.0 }
 0x202   : > { %v1188_v12 = vmul.f32 %v1187_v11, %v1187_v11 }
 0x204   : > { %1189 = vadd.xlane.f32.xlu0 %v1188_v12 }
 0x28d   : > { %v1190_v19 = vpop.xlane.xlu0 %1189 }
 0x28e   : > { %v1191_v20 = vmul.f32 0.03125, %v1190_v19 }
 0x290   : > { %v1192_v21 = vadd.f32 1e-05, %v1191_v20 }
 0x292   : > { %1968 = vrsqrt.f32 %v1192_v21 }
 0x29f   : > { %v1969_v22 = vpop.eup %1968 }
 0x2a0   : > { %v1194_v23 = vmul.f32 %v1969_v22, %v1187_v11 }
 0x2a2   : > { %v1195_v24 = vmax.f32 %v1194_v23, 0.0 }
 0x2a4   : > { %v1196_v25 = vpack.c.bf16 %v1195_v24, %v1195_v24 }
 0x2a6   : > { %1785 = vmatmul.mubr.bf16.vlgmr.msra.gmra.mxu1 %v1196_v25 }
 0x366   : > { %v1302_v27 = vpop.f32.mrf.mxu1 }
 0x367   : > { %v1303_v28 = vadd.f32 %v1618_v26, %v1302_v27 }
 0x368   : > { %v1786_v29 = vpop.f32.mrf.mxu1 }
 0x369   : > { %1308 = vadd.xlane.f32.xlu1 %v1303_v28 }
 0x36a   : > { %v1305_v30 = vpop.f32.mrf.mxu1 }
 0x36c   : > { %v1787_v31 = vpop.f32.mrf.mxu1 }
 0x3f2   : > { %v1309_v34 = vpop.xlane.xlu1 %1308 }
 0x3f3   : > { %v1310_v35 = vmul.f32 0.03125, %v1309_v34 }
 0x3f5   : > { %v1311_v36 = vsub.f32 %v1303_v28, %v1310_v35 }
 0x3f7   : > { %v1312_v37 = vsel %vm313_vm0, %v1311_v36, 0.0 }
 0x3f8   : > { %v1313_v38 = vmul.f32 %v1312_v37, %v1312_v37 }
 0x3fa   : > { %1314 = vadd.xlane.f32.xlu1 %v1313_v38 }
 0x483   : > { %v1315_v45 = vpop.xlane.xlu1 %1314 }
 0x484   : > { %v1316_v46 = vmul.f32 0.03125, %v1315_v45 }
 0x486   : > { %v1317_v47 = vadd.f32 1e-05, %v1316_v46 }
 0x488   : > { %1970 = vrsqrt.f32 %v1317_v47 }
 0x495   : > { %v1971_v48 = vpop.eup %1970 }
 0x496   : > { %v1319_v49 = vmul.f32 %v1971_v48, %v1312_v37 }
 0x498   : > { %v1320_v50 = vmax.f32 %v1319_v49, 0.0 }
 0x49a   : > { %v1321_v51 = vpack.c.bf16 %v1320_v50, %v1320_v50 }
 0x49c   : > { %1805 = vmatmul.mubr.bf16.vlgmr.msra.gmra.mxu0 %v1321_v51 }
 0x55c   : > { %v1427_v53 = vpop.f32.mrf.mxu0 }
 0x55d   : > { %v1428_v54 = vadd.f32 %v1627_v52, %v1427_v53 }
 0x55e   : > { %v1806_v55 = vpop.f32.mrf.mxu0 }
 0x55f   : > { %1434 = vst.msk [vmem:[%s309_s23] sm:$0xff] %vm1433_vm2, %v1428_v54 }
 0x560   : > { %v1430_v56 = vpop.f32.mrf.mxu0 }
 0x561   : > { %2039 = shalt.err (!%p2036_p0)
}
 0x562   : > { %s2040_s16 = scalar_lea.hbm %s2355_s11, 128  ;;  %s2044_s18 = scalar_lea.hbm %s2404_s7, 512 }
 0x563   : > { %p2041_p10 = scmp.ne.s32.totalorder %s2355_s11, %s2040_s16  ;;  %p2045_p1 = scmp.lt.s32.totalorder %s2355_s11, %s2404_s7 }
 0x564   : > { %p2046_p4 = scmp.lt.s32.totalorder %s2044_s18, %s2040_s16 }
 0x565   : > { %p2042_p9 = pnand %p2041_p10, %p2423_p3 }
 0x566   : > { %p2047_p6 = por %p2046_p4, %p2045_p1 }
 0x567   : > { %p2043_p11 = pneg %p2042_p9 }
 0x569   : > { %p2048_p8 = pnand %p2047_p6, %p2043_p11 }
 0x56b   : > { %2051 = shalt.err (!%p2048_p8)
}
 0x56c   : > { %1817 = dma.vmem_to_hbm [thread:$0]  (%p2423_p3), %s2357_s14, 128, %s2355_s11, %s1436_s30   ;;  %v1807_v57 = vpop.f32.mrf.mxu0 }
 0x56d PF: > { %p1834_p5 = scmp.ge.s32.totalorder %s2094_s27, 2  ;;  %s1461_s10 = sand.u32 1, %s2082_s24  }
 0x56e   : > { %p2424_p7 = scmp.ne.s32.totalorder %s2411_s8, 0  ;;  %s1462_s23 = scalar_lea.sflag [#allocation4], %s1461_s10 }
 0x570   : > { %p1828_p12 = pnand %p1834_p5, %p2424_p7 }
 0x572   : > { %p1829_p2 = pneg %p1828_p12 }
 0x574   : > { %2077 = dma.done.wait (%p1829_p2), %s1462_s23, 128  }
 0x575   : > { %2079 = vsyncadd (%p1829_p2), %s1462_s23, 4294967168  ;;  %s2425_s22 = sld [smem:[#allocation11_spill]]  ;;  %p21_p13 = scmp.ge.s32.totalorder %s2196_s13, 6  }
 0x576   : > { %s2426_s24 = smov %s2086_s25  ;;  %s2427_s25 = smov %s2090_s26 }
 0x577   : > { %s2429_s27 = smov %s2196_s13  ;;  %23 = sbr.rel (!%p21_p13) target bundleno = 8 (0x8), region = 97 }
 0x57b   : > { %s2428_s26 = smov %s2425_s22 }
 0x57c   :  { %1467 = vsyncpa [#allocation3], 1 }
 0x57d   :  { %1469 = vsyncpa [#allocation3 + $0x1], 1 }
 0x57e   :  { %1470 = vsyncpa [#allocation6], 1 }
 0x57f   :  { %1471 = vsyncpa [#allocation4], 1 }
 0x580   :  { %1473 = vsyncpa [#allocation4 + $0x1], 1 }

// kernel: instance_norm_mlp.1
= control target key start
LH: loop header
LB: loop body
LE: loop exit
PB: predicated region body
PF: predicated region fallthrough
CT: control target
= control target key end

     0   :  { %s2397_s0 = inlined_call_operand.hbm [shape: f32[32,1280], index: 0, kind: input, shape index: {}]   ;;  %s2398_s1 = inlined_call_operand.hbm [shape: bf16[1280,128], index: 1, kind: input, shape index: {}]   ;;  %s2399_s2 = inlined_call_operand.vmem [shape: f32[1,128], index: 2, kind: input, shape index: {}]   ;;  %s2400_s3 = inlined_call_operand.vmem [shape: bf16[128,128], index: 3, kind: input, shape index: {}]   ;;  %s2401_s4 = inlined_call_operand.vmem [shape: f32[1,128], index: 4, kind: input, shape index: {}]   ;;  %s2402_s5 = inlined_call_operand.vmem [shape: bf16[128,16], index: 5, kind: input, shape index: {}]   ;;  %s2403_s6 = inlined_call_operand.vmem [shape: f32[1,16], index: 6, kind: input, shape index: {}]   ;;  %s2404_s7 = inlined_call_operand.hbm [shape: f32[32,16], index: 7, kind: output, shape index: {}]  }
   0x1   :  { %2409 = sst [smem:[#allocation12_spill]] %s2398_s1 }
   0x2   :  { %12 = vsyncpa [#allocation3], 0 }
   0x3   :  { %14 = vsyncpa [#allocation3 + $0x1], 0 }
   0x4   :  { %15 = vsyncpa [#allocation6], 0 }
   0x5   :  { %16 = vsyncpa [#allocation4], 0 }
   0x6   :  { %18 = vsyncpa [#allocation4 + $0x1], 0  ;;  %s2143_s24 = smov 0   ;;  %s2145_s25 = smov 0  }
   0x7   :  { %s2147_s26 = smov 0   ;;  %s2149_s27 = smov 0  }
   0x8 LB: > { %s2164_s28 = sadd.s32 4294967295, %s2094_s27   ;;  %s1529_s29 = sadd.s32 4294967294, %s2094_s27   ;;  %s2094_s27 = sphi %s2149_s27, %s2429_s27   ;;  %s2090_s26 = sphi %s2147_s26, %s2428_s26   ;;  %s2086_s25 = sphi %s2145_s25, %s2427_s25   ;;  %s2082_s24 = sphi %s2143_s24, %s2426_s24  }
   0x9   : > { %p44_p0 = scmp.ne.s32.totalorder %s2086_s25, %s2082_s24  ;;  %p2405_p1 = scmp.eq.s32.totalorder %s2164_s28, 0 }
   0xa   : > { %p200_p3 = scmp.eq.s32.totalorder %s1529_s29, 3  ;;  %p1530_p5 = scmp.ge.s32.totalorder %s2094_s27, 1 }
   0xb   : > { %p2173_p4 = por %p2405_p1, %p44_p0  ;;  %p207_p7 = scmp.lt.s32.totalorder %s2094_s27, 5 }
   0xc   : > { %p2178_p6 = por %p200_p3, %p44_p0  ;;  %s2096_s10 = smov [#allocation5]  }
   0xd   : > { %s2410_s30 = scalar_select %p2173_p4, 1, 0 }
   0xe   : > { %s2411_s8 = scalar_select %p2178_p6, 1, 0 }
   0xf   : > { %p2183_p8 = pnand %p1530_p5, %p207_p7  ;;  %s219_s11 = sshll.u32 %s2096_s10, 4  ;;  %s220_s11 = int_to_ptr.vmem [resolvable:$true] %s219_s11 }
  0x10   : > { %s2196_s13 = sadd.s32 1, %s2094_s27   ;;  %s31_s14 = sadd.s32 1, %s2090_s26 }
  0x11   : > { %s2412_s9 = scalar_select %p2183_p8, 1, 0 }
  0x12   : > { %p1819_p9 = pneg %p2183_p8  ;;  %s28_s15 = ssub.s32 %s2094_s27, %s2196_s13 }
  0x13   : > { %s1983_s16 = scalar_lea.vmem %s220_s11, 10240  ;;  %p1991_p3 = scmp.lt.s32.totalorder %s220_s11, %s220_s11 }
  0x14   : > { %p2191_p10 = pnand %p1819_p9, %p2405_p1  ;;  %p1984_p12 = scmp.ne.s32.totalorder %s220_s11, %s1983_s16 }
  0x15   : > { %p1992_p5 = scmp.lt.s32.totalorder %s1983_s16, %s1983_s16 }
  0x16   : > { %p1974_p11 = pneg %p2191_p10 }
  0x17   : > { %p1993_p7 = por %p1992_p5, %p1991_p3 }
  0x18   : > { %p1986_p13 = pnand %p1984_p12, %p1974_p11 }
  0x1a   : > { %p1987_p0 = pneg %p1986_p13 }
  0x1c   : > { %p1994_p2 = pnand %p1993_p7, %p1987_p0 }
  0x1e   : > { %1997 = shalt.err (!%p1994_p2)
}
  0x1f   : > { %s2097_s17 = smov 64   ;;  %s2098_s18 = smov 4  }
  0x20   : > { %s2414_s1 = sld [smem:[#allocation12_spill]]  ;;  %p29_p9 = scmp.eq.s32.totalorder %s28_s15, 0 }
  0x21   : > { %p38_p11 = scmp.ne.s32.totalorder %s2090_s26, %s2086_s25  ;;  %p39_p12 = scmp.eq.s32.totalorder %s2094_s27, 0 }
  0x22   : > { %p1832_p2 = scmp.lt.s32.totalorder %s2094_s27, 4  ;;  %p2416_p0 = scmp.eq.s32.totalorder %s2164_s28, 3 }
  0x23   : > { %s2213_s21 = scalar_select %p29_p9, %s2090_s26, %s31_s14  }
  0x24   : > { %p40_p13 = por %p39_p12, %p38_p11  ;;  %p2217_p3 = por %p2416_p0, %p38_p11 }
  0x25   : > { %2415 = sst [smem:[#allocation11_spill]] %s2213_s21  ;;  %s248_s23 = sand.u32 1, %s2090_s26  }
  0x26   : > { %1822 = dma.hbm_to_vmem [thread:$0]  (!%p2191_p10), %s2414_s1, 10240, %s220_s11, [#allocation6], %s2097_s17, %s2097_s17, %s2098_s18  }
  0x27   : > { %s2417_s22 = scalar_select %p2217_p3, 1, 0 }
  0x28   : > { %s1809_s29 = smul.u32 1280, %s2094_s27  ;;  %p2223_p5 = pnand %p1832_p2, %p40_p13 }
  0x29   : > { %s1808_s10 = smul.u32 80, %s248_s23  ;;  %s249_s18 = scalar_lea.sflag [#allocation3], %s248_s23 }
  0x2a   : > { %s2230_s16 = scalar_lea.hbm %s2397_s0, %s1809_s29  ;;  %p2000_p7 = pneg %p2223_p5 }
  0x2b   : > { %s252_s14 = scalar_lea.vmem [#allocation2], %s1808_s10  ;;  %s1998_s19 = scalar_lea.hbm %s2230_s16, 1280 }
  0x2c   : > { %s260_s17 = sshll.u32 %s252_s14, 4  ;;  %p1999_p10 = scmp.ne.s32.totalorder %s2230_s16, %s1998_s19  ;;  %s261_s17 = int_to_ptr.vmem [resolvable:$true] %s260_s17 }
  0x2d   : > { %s2003_s11 = scalar_lea.hbm %s2397_s0, 5120  ;;  %p2004_p12 = scmp.lt.s32.totalorder %s2230_s16, %s2397_s0 }
  0x2e   : > { %p2001_p9 = pnand %p2000_p7, %p1999_p10  ;;  %p2005_p2 = scmp.lt.s32.totalorder %s2003_s11, %s1998_s19 }
  0x30   : > { %p2002_p11 = pneg %p2001_p9  ;;  %p2006_p13 = por %p2005_p2, %p2004_p12 }
  0x32   : > { %p2007_p0 = pnand %p2006_p13, %p2002_p11 }
  0x34   : > { %2010 = shalt.err (!%p2007_p0)
}
  0x35   : > { %s2011_s10 = scalar_lea.vmem %s261_s17, 1280  ;;  %s2099_s23 = smov [#allocation2]  }
  0x36   : > { %p2012_p1 = scmp.ne.s32.totalorder %s261_s17, %s2011_s10  ;;  %s2016_s14 = sshll.u32 %s2099_s23, 4  ;;  %s2017_s14 = int_to_ptr.vmem [resolvable:$false] %s2016_s14 }
  0x37   : > { %s2018_s21 = scalar_lea.vmem %s2017_s14, 2560  ;;  %p2019_p10 = scmp.lt.s32.totalorder %s261_s17, %s2017_s14 }
  0x38   : > { %p2014_p6 = pnand %p2012_p1, %p2000_p7  ;;  %p2020_p9 = scmp.lt.s32.totalorder %s2018_s21, %s2011_s10 }
  0x3a   : > { %p2015_p3 = pneg %p2014_p6  ;;  %p2021_p4 = por %p2020_p9, %p2019_p10 }
  0x3c   : > { %p2022_p8 = pnand %p2021_p4, %p2015_p3 }
  0x3e   : > { %2025 = shalt.err (!%p2022_p8)
}
  0x3f   : > { %1826 = dma.hbm_to_vmem [thread:$0]  (!%p2223_p5), %s2230_s16, 1280, %s261_s17, %s249_s18  }
  0x40   : > { %p2419_p11 = scmp.ne.s32.totalorder %s2412_s9, 0 }
  0x41   : > { %s2249_s1 = sand.u32 (!%p2419_p11), 1, %s2086_s25   ;;  %p2420_p1 = scmp.ne.s32.totalorder (!%p2419_p11), %s2410_s30, 0 }
  0x42   : > { %269 = sbr.rel (%p2419_p11) target bundleno = 1389 (0x56d), region = 48  ;;  %s272_s20 = scalar_lea.sflag (!%p2419_p11), [#allocation3], %s2249_s1 }
  0x43   : > { %s1810_s19 = smul.u32 (!%p2419_p11), 80, %s2249_s1 }
  0x45   : > { %s2253_s11 = scalar_lea.vmem (!%p2419_p11), [#allocation2], %s1810_s19 }
  0x47   : > { %2069 = dma.done.wait (%p2420_p1), %s272_s20, 1280  }
  0x48   : > { %2071 = vsyncadd (%p2420_p1), %s272_s20, 4294966016  ;;  %p2421_p4 = scmp.eq.s32.totalorder %s2164_s28, 0 }
  0x4a   : > { %2073 = dma.done.wait (%p2421_p4), [#allocation6], 10240   ;;  %p2422_p6 = pmov %p2421_p4 }
  0x4b   : > { %v1872_v0 = vld [vmem:[#allocation5 + $0x78] sm:$0xff]   ;;  %v1876_v4 = vld [vmem:[#allocation5 + $0x70] sm:$0xff]   ;;  %v1880_v8 = vld [vmem:[#allocation5 + $0x68] sm:$0xff]   ;;  %vm2101_vm1 = vmmov 0   ;;  %s1536_s18 = sshll.u32 %s2249_s1, 3  ;;  %s1637_s10 = sshll.u32 %s2164_s28, 7 }
  0x4c   : > { %2075 = vsyncadd (%p2422_p6), [#allocation6], 4294957056  ;;  %v1873_v1 = vld [vmem:[#allocation5 + $0x38] sm:$0xff]   ;;  %1640 = vmatprep.subr.bf16.mxu0 %v1872_v0  ;;  %v1877_v5 = vld [vmem:[#allocation5 + $0x30] sm:$0xff]   ;;  %s309_s23 = scalar_lea.vmem [#allocation7], %s1536_s18  ;;  %vm1433_vm2 = vcmask 130048  }
  0x4d   : > { %v1874_v2 = vld [vmem:[#allocation5 + $0xf8] sm:$0xff]   ;;  %1641 = vmatpush3.bf16.msra.mxu0 %v1873_v1  ;;  %v1878_v6 = vld [vmem:[#allocation5 + $0xf0] sm:$0xff]   ;;  %v1881_v9 = vld [vmem:[#allocation5 + $0x28] sm:$0xff]   ;;  %s1449_s14 = sshll.u32 %s309_s23, 4  ;;  %s1436_s30 = scalar_lea.sflag [#allocation4], %s2249_s1  ;;  %s2357_s14 = int_to_ptr.vmem [resolvable:$true] %s1449_s14 }
  0x4e   : > { %v1875_v3 = vld [vmem:[#allocation5 + $0xb8] sm:$0xff]   ;;  %1662 = vmatprep.subr.bf16.mxu1 %v1874_v2  ;;  %1642 = vmatprep.subr.bf16.mxu0 %v1876_v4  ;;  %v1879_v7 = vld [vmem:[#allocation5 + $0xb0] sm:$0xff]   ;;  %v1882_v10 = vld [vmem:[#allocation5 + $0xe8] sm:$0xff]   ;;  %s2026_s28 = scalar_lea.vmem %s2357_s14, 128  ;;  %p2423_p3 = scmp.ne.s32.totalorder %s2417_s22, 0 }
  0x4f   : > { %1663 = vmatpush3.bf16.msra.mxu1 %v1875_v3  ;;  %v1883_v11 = vld [vmem:[#allocation5 + $0xa8] sm:$0xff]   ;;  %v1884_v12 = vld [vmem:[#allocation5 + $0x60] sm:$0xff]   ;;  %v1888_v16 = vld [vmem:[#allocation5 + $0x58] sm:$0xff]   ;;  %p2027_p8 = scmp.ne.s32.totalorder %s2357_s14, %s2026_s28  ;;  %s2102_s9 = smov [#allocation7]  }
  0x50   : > { %1664 = vmatprep.subr.bf16.mxu1 %v1878_v6  ;;  %v1885_v13 = vld [vmem:[#allocation5 + $0x20] sm:$0xff]   ;;  %v1889_v17 = vld [vmem:[#allocation5 + $0x18] sm:$0xff]   ;;  %v1892_v20 = vld [vmem:[#allocation5 + $0x50] sm:$0xff]   ;;  %s2030_s21 = sshll.u32 %s2102_s9, 4  ;;  %s2031_s21 = int_to_ptr.vmem [resolvable:$false] %s2030_s21 }
  0x51   : > { %1643 = vmatpush3.bf16.msra.mxu0 %v1877_v5  ;;  %v1886_v14 = vld [vmem:[#allocation5 + $0xe0] sm:$0xff]   ;;  %v1890_v18 = vld [vmem:[#allocation5 + $0xd8] sm:$0xff]   ;;  %v1893_v21 = vld [vmem:[#allocation5 + $0x10] sm:$0xff]   ;;  %p2028_p5 = pnand %p2027_p8, %p2423_p3  ;;  %s2032_s12 = scalar_lea.vmem %s2031_s21, 256 }
  0x52   : > { %1644 = vmatprep.subr.bf16.mxu0 %v1880_v8  ;;  %v1887_v15 = vld [vmem:[#allocation5 + $0xa0] sm:$0xff]   ;;  %v1891_v19 = vld [vmem:[#allocation5 + $0x98] sm:$0xff]   ;;  %v1894_v22 = vld [vmem:[#allocation5 + $0xd0] sm:$0xff]   ;;  %p2033_p12 = scmp.lt.s32.totalorder %s2357_s14, %s2031_s21  ;;  %p2034_p2 = scmp.lt.s32.totalorder %s2032_s12, %s2026_s28 }
  0x53   : > { %1665 = vmatpush3.bf16.msra.mxu1 %v1879_v7  ;;  %v1895_v23 = vld [vmem:[#allocation5 + $0x90] sm:$0xff]   ;;  %v1896_v24 = vld [vmem:[#allocation5 + $0x48] sm:$0xff]   ;;  %v1900_v28 = vld [vmem:[#allocation5 + $0x40] sm:$0xff]   ;;  %p2029_p7 = pneg %p2028_p5 }
  0x54   : > { %1666 = vmatprep.subr.bf16.mxu1 %v1882_v10  ;;  %v1897_v25 = vld [vmem:[#allocation5 + $0x8] sm:$0xff]   ;;  %v1901_v29 = vld [vmem:[#allocation5] sm:$0xff]   ;;  %v1904_v36 = vld [vmem:[#allocation5 + $0x178] sm:$0xff]   ;;  %p2035_p13 = por %p2034_p2, %p2033_p12 }
  0x55   : > { %1645 = vmatpush3.bf16.msra.mxu0 %v1881_v9  ;;  %v1898_v26 = vld [vmem:[#allocation5 + $0xc8] sm:$0xff]   ;;  %v1902_v30 = vld [vmem:[#allocation5 + $0xc0] sm:$0xff]   ;;  %v1905_v39 = vld [vmem:[#allocation5 + $0x138] sm:$0xff]  }
  0x56   : > { %1646 = vmatprep.subr.bf16.mxu0 %v1884_v12  ;;  %v1899_v27 = vld [vmem:[#allocation5 + $0x88] sm:$0xff]   ;;  %v1903_v33 = vld [vmem:[#allocation5 + $0x80] sm:$0xff]   ;;  %v1906_v42 = vld [vmem:[#allocation5 + $0x1f8] sm:$0xff]   ;;  %p2036_p0 = pnand %p2035_p13, %p2029_p7 }
  0x57   : > { %1667 = vmatpush3.bf16.msra.mxu1 %v1883_v11  ;;  %v315_v31 = vld [vmem:[%s2253_s11 + $0x8] sm:$0xff]  ;;  %v314_v34 = vld [vmem:[%s2253_s11] sm:$0xff]  ;;  %v317_v37 = vld [vmem:[%s2253_s11 + $0x18] sm:$0xff] }
  0x58   : > { %1668 = vmatprep.subr.bf16.mxu1 %v1886_v14  ;;  %v325_v32 = vpack.c.bf16 %v315_v31, %v315_v31  ;;  %v324_v35 = vpack.c.bf16 %v314_v34, %v314_v34  ;;  %v327_v38 = vpack.c.bf16 %v317_v37, %v317_v37  ;;  %v316_v40 = vld [vmem:[%s2253_s11 + $0x10] sm:$0xff]  ;;  %v1907_v43 = vld [vmem:[#allocation5 + $0x1b8] sm:$0xff]   ;;  %v1912_v48 = vld [vmem:[#allocation5 + $0x168] sm:$0xff]  }
  0x59   : > { %1647 = vmatpush3.bf16.msra.mxu0 %v1885_v13  ;;  %v326_v41 = vpack.c.bf16 %v316_v40, %v316_v40  ;;  %v1908_v44 = vld [vmem:[#allocation5 + $0x170] sm:$0xff]   ;;  %v1913_v49 = vld [vmem:[#allocation5 + $0x128] sm:$0xff]   ;;  %v1916_v52 = vld [vmem:[#allocation5 + $0x160] sm:$0xff]  }
  0x5a   : > { %1648 = vmatprep.subr.bf16.mxu0 %v1888_v16  ;;  %1013 = vmatprep.mubr.bf16.mxu0 %v325_v32  ;;  %v1909_v45 = vld [vmem:[#allocation5 + $0x130] sm:$0xff]   ;;  %v1914_v50 = vld [vmem:[#allocation5 + $0x1e8] sm:$0xff]   ;;  %v1917_v53 = vld [vmem:[#allocation5 + $0x120] sm:$0xff]  }
  0x5b   : > { %1669 = vmatpush3.bf16.msra.mxu1 %v1887_v15  ;;  %1053 = vmatprep.mubr.bf16.mxu1 %v327_v38  ;;  %v1910_v46 = vld [vmem:[#allocation5 + $0x1f0] sm:$0xff]   ;;  %v1915_v51 = vld [vmem:[#allocation5 + $0x1a8] sm:$0xff]   ;;  %v1918_v54 = vld [vmem:[#allocation5 + $0x1e0] sm:$0xff]  }
  0x5c   : > { %1670 = vmatprep.subr.bf16.mxu1 %v1890_v18  ;;  %v1911_v47 = vld [vmem:[#allocation5 + $0x1b0] sm:$0xff]   ;;  %v1919_v55 = vld [vmem:[#allocation5 + $0x1a0] sm:$0xff]   ;;  %v1920_v56 = vld [vmem:[#allocation5 + $0x158] sm:$0xff]  }
  0x5d   : > { %1649 = vmatpush3.bf16.msra.mxu0 %v1889_v17  ;;  %v1921_v57 = vld [vmem:[#allocation5 + $0x118] sm:$0xff]   ;;  %v1924_v60 = vld [vmem:[#allocation5 + $0x150] sm:$0xff]   ;;  %v1928_v0 = vld [vmem:[#allocation5 + $0x148] sm:$0xff]  }
  0x5e   : > { %1650 = vmatprep.subr.bf16.mxu0 %v1892_v20  ;;  %v1922_v58 = vld [vmem:[#allocation5 + $0x1d8] sm:$0xff]   ;;  %v1925_v61 = vld [vmem:[#allocation5 + $0x110] sm:$0xff]   ;;  %v1929_v1 = vld [vmem:[#allocation5 + $0x108] sm:$0xff]  }
  0x5f   : > { %1671 = vmatpush3.bf16.msra.mxu1 %v1891_v19  ;;  %v1923_v59 = vld [vmem:[#allocation5 + $0x198] sm:$0xff]   ;;  %v1926_v62 = vld [vmem:[#allocation5 + $0x1d0] sm:$0xff]   ;;  %v1930_v2 = vld [vmem:[#allocation5 + $0x1c8] sm:$0xff]  }
  0x60   : > { %1672 = vmatprep.subr.bf16.mxu1 %v1894_v22  ;;  %v1927_v63 = vld [vmem:[#allocation5 + $0x190] sm:$0xff]   ;;  %v1931_v3 = vld [vmem:[#allocation5 + $0x188] sm:$0xff]   ;;  %v1932_v4 = vld [vmem:[#allocation5 + $0x140] sm:$0xff]  }
  0x61   : > { %1651 = vmatpush3.bf16.msra.mxu0 %v1893_v21  ;;  %v1933_v5 = vld [vmem:[#allocation5 + $0x100] sm:$0xff]   ;;  %v319_v7 = vld [vmem:[%s2253_s11 + $0x28] sm:$0xff]  ;;  %v321_v13 = vld [vmem:[%s2253_s11 + $0x38] sm:$0xff] }
  0x62   : > { %1652 = vmatprep.subr.bf16.mxu0 %v1896_v24  ;;  %v1934_v6 = vld [vmem:[#allocation5 + $0x1c0] sm:$0xff]   ;;  %v329_v8 = vpack.c.bf16 %v319_v7, %v319_v7  ;;  %v1936_v12 = vld [vmem:[#allocation5 + $0x278] sm:$0xff]   ;;  %v331_v14 = vpack.c.bf16 %v321_v13, %v321_v13  ;;  %v1938_v18 = vld [vmem:[#allocation5 + $0x270] sm:$0xff]  }
  0x63   : > { %1673 = vmatpush3.bf16.msra.mxu1 %v1895_v23  ;;  %v1935_v9 = vld [vmem:[#allocation5 + $0x180] sm:$0xff]   ;;  %v1937_v15 = vld [vmem:[#allocation5 + $0x238] sm:$0xff]   ;;  %v1939_v19 = vld [vmem:[#allocation5 + $0x230] sm:$0xff]  }
  0x64   : > { %1674 = vmatprep.subr.bf16.mxu1 %v1898_v26  ;;  %v318_v10 = vld [vmem:[%s2253_s11 + $0x20] sm:$0xff]  ;;  %v320_v16 = vld [vmem:[%s2253_s11 + $0x30] sm:$0xff]  ;;  %v1940_v20 = vld [vmem:[#allocation5 + $0x268] sm:$0xff]  }
  0x65   : > { %1653 = vmatpush3.bf16.msra.mxu0 %v1897_v25  ;;  %v328_v11 = vpack.c.bf16 %v318_v10, %v318_v10  ;;  %v330_v17 = vpack.c.bf16 %v320_v16, %v320_v16  ;;  %v1941_v21 = vld [vmem:[#allocation5 + $0x228] sm:$0xff]   ;;  %v1942_v22 = vld [vmem:[#allocation5 + $0x260] sm:$0xff]   ;;  %v1944_v24 = vld [vmem:[#allocation5 + $0x258] sm:$0xff]  }
  0x66   : > { %1654 = vmatprep.subr.bf16.mxu0 %v1900_v28  ;;  %v1943_v23 = vld [vmem:[#allocation5 + $0x220] sm:$0xff]   ;;  %v1945_v25 = vld [vmem:[#allocation5 + $0x218] sm:$0xff]   ;;  %v1949_v31 = vld [vmem:[#allocation5 + $0x208] sm:$0xff]  }
  0x67   : > { %1675 = vmatpush3.bf16.msra.mxu1 %v1899_v27  ;;  %v323_v26 = vld [vmem:[%s2253_s11 + $0x48] sm:$0xff]  ;;  %v1946_v27 = vld [vmem:[#allocation5 + $0x250] sm:$0xff]   ;;  %v1950_v32 = vld [vmem:[#allocation5 + $0x240] sm:$0xff]  }
  0x68   : > { %1676 = vmatprep.subr.bf16.mxu1 %v1902_v30  ;;  %v333_v28 = vpack.c.bf16 %v323_v26, %v323_v26  ;;  %v1948_v30 = vld [vmem:[#allocation5 + $0x248] sm:$0xff]   ;;  %v322_v34 = vld [vmem:[%s2253_s11 + $0x40] sm:$0xff]  ;;  %s2355_s11 = scalar_lea.hbm %s2404_s7, %s1637_s10 }
  0x69   : > { %1655 = vmatpush3.bf16.msra.mxu0 %v1901_v29  ;;  %v1947_v29 = vld [vmem:[#allocation5 + $0x210] sm:$0xff]   ;;  %v1954_v13 = vld [vmem:[%s2400_s3 + $0x28] sm:$0xff]   ;;  %v1618_v26 = vld [vmem:[%s2401_s4] ss:$0 sm:$0xff] }
  0x6a   : > { %1684 = vmatprep.subr.bf16.mxu0 %v1904_v36  ;;  %v1957_v16 = vld [vmem:[%s2400_s3 + $0x10] sm:$0xff]  }
  0x6b   : > { %1677 = vmatpush3.bf16.msra.mxu1 %v1903_v33  ;;  %v1951_v33 = vld [vmem:[#allocation5 + $0x200] sm:$0xff]  }
  0x6c   : > { %1014 = vmatmul.mubr.bf16.vlgmr.msra.gmra.mxu0 %v324_v35  ;;  %1706 = vmatprep.subr.bf16.mxu1 %v1906_v42  ;;  %v332_v35 = vpack.c.bf16 %v322_v34, %v322_v34 }
  0x6d   : > { %1685 = vmatpush3.bf16.msra.mxu0 %v1905_v39  ;;  %1093 = vmatprep.mubr.bf16.mxu0 %v329_v8 }
  0x6e   : > { %1054 = vmatmul.mubr.bf16.vlgmr.msra.gmra.mxu1 %v326_v41  ;;  %1686 = vmatprep.subr.bf16.mxu0 %v1908_v44 }
  0x6f   : > { %1707 = vmatpush3.bf16.msra.mxu1 %v1907_v43  ;;  %1133 = vmatprep.mubr.bf16.mxu1 %v331_v14  ;;  %v1955_v14 = vld [vmem:[%s2400_s3 + $0x20] sm:$0xff]  }
  0x70   : > { %1708 = vmatprep.subr.bf16.mxu1 %v1910_v46 }
  0x71   : > { %1687 = vmatpush3.bf16.msra.mxu0 %v1909_v45 }
  0x72   : > { %1688 = vmatprep.subr.bf16.mxu0 %v1912_v48 }
  0x73   : > { %1709 = vmatpush3.bf16.msra.mxu1 %v1911_v47 }
  0x74   : > { %1710 = vmatprep.subr.bf16.mxu1 %v1914_v50 }
  0x75   : > { %1689 = vmatpush3.bf16.msra.mxu0 %v1913_v49 }
  0x76   : > { %1690 = vmatprep.subr.bf16.mxu0 %v1916_v52 }
  0x77   : > { %1711 = vmatpush3.bf16.msra.mxu1 %v1915_v51 }
  0x78   : > { %1712 = vmatprep.subr.bf16.mxu1 %v1918_v54 }
  0x79   : > { %1691 = vmatpush3.bf16.msra.mxu0 %v1917_v53  ;;  %v1537_v53 = vld [vmem:[%s2399_s2] ss:$0 sm:$0xff] }
  0x7a   : > { %1692 = vmatprep.subr.bf16.mxu0 %v1920_v56 }
  0x7b   : > { %1713 = vmatpush3.bf16.msra.mxu1 %v1919_v55 }
  0x7c   : > { %1714 = vmatprep.subr.bf16.mxu1 %v1922_v58 }
  0x7d   : > { %1693 = vmatpush3.bf16.msra.mxu0 %v1921_v57 }
  0x7e   : > { %1694 = vmatprep.subr.bf16.mxu0 %v1924_v60 }
  0x7f   : > { %1715 = vmatpush3.bf16.msra.mxu1 %v1923_v59 }
  0x80   : > { %1716 = vmatprep.subr.bf16.mxu1 %v1926_v62 }
  0x81   : > { %1695 = vmatpush3.bf16.msra.mxu0 %v1925_v61 }
  0x82   : > { %1696 = vmatprep.subr.bf16.mxu0 %v1928_v0 }
  0x83   : > { %1717 = vmatpush3.bf16.msra.mxu1 %v1927_v63 }
  0x84   : > { %1718 = vmatprep.subr.bf16.mxu1 %v1930_v2 }
  0x85   : > { %1697 = vmatpush3.bf16.msra.mxu0 %v1929_v1 }
  0x86   : > { %1698 = vmatprep.subr.bf16.mxu0 %v1932_v4  ;;  %v2100_v4 = vmov 0.0  }
  0x87   : > { %1719 = vmatpush3.bf16.msra.mxu1 %v1931_v3  ;;  %v1952_v3 = vld [vmem:[%s2400_s3 + $0x38] sm:$0xff]  }
  0x88   : > { %1720 = vmatprep.subr.bf16.mxu1 %v1934_v6  ;;  %v311_v6 = vlaneseq }
  0x89   : > { %1699 = vmatpush3.bf16.msra.mxu0 %v1933_v5  ;;  %v1953_v5 = vld [vmem:[%s2400_s3 + $0x30] sm:$0xff]  }
  0x8a   : > { %1728 = vmatprep.subr.bf16.mxu0 %v1936_v12  ;;  %v312_v7 = vand.u32 127, %v311_v6 }
  0x8b   : > { %1721 = vmatpush3.bf16.msra.mxu1 %v1935_v9 }
  0x8c   : > { %1094 = vmatmul.mubr.bf16.vlgmr.msra.gmra.mxu0 %v328_v11  ;;  %1768 = vmatprep.subr.bf16.mxu1 %v2100_v4  ;;  %vm313_vm0 = vcmp.lt.s32.totalorder %v312_v7, 32 }
  0x8d   : > { %1729 = vmatpush3.bf16.msra.mxu0 %v1937_v15  ;;  %1173 = vmatprep.mubr.bf16.mxu0 %v333_v28  ;;  %v1956_v15 = vld [vmem:[%s2400_s3 + $0x18] sm:$0xff]  }
  0x8e   : > { %1134 = vmatmul.mubr.bf16.vlgmr.msra.gmra.mxu1 %v330_v17  ;;  %1730 = vmatprep.subr.bf16.mxu0 %v1938_v18  ;;  %v1958_v17 = vld [vmem:[%s2400_s3 + $0x8] sm:$0xff]   ;;  %v1959_v18 = vld [vmem:[%s2400_s3] sm:$0xff]  }
  0x8f   : > { %1769 = vmatpush3.bf16.msra.mxu1 %v1952_v3  ;;  %1784 = vmatprep.mubr.msk.bf16.mxu1 %vm2101_vm1, %v2100_v4 }
  0x90   : > { %1770 = vmatprep.subr.bf16.mxu1 %v2100_v4 }
  0x91   : > { %1731 = vmatpush3.bf16.msra.mxu0 %v1939_v19 }
  0x92   : > { %1732 = vmatprep.subr.bf16.mxu0 %v1940_v20 }
  0x93   : > { %1771 = vmatpush3.bf16.msra.mxu1 %v1953_v5 }
  0x94   : > { %1772 = vmatprep.subr.bf16.mxu1 %v2100_v4 }
  0x95   : > { %1733 = vmatpush3.bf16.msra.mxu0 %v1941_v21 }
  0x96   : > { %1734 = vmatprep.subr.bf16.mxu0 %v1942_v22 }
  0x97   : > { %1773 = vmatpush3.bf16.msra.mxu1 %v1954_v13 }
  0x98   : > { %1774 = vmatprep.subr.bf16.mxu1 %v2100_v4 }
  0x99   : > { %1735 = vmatpush3.bf16.msra.mxu0 %v1943_v23 }
  0x9a   : > { %1736 = vmatprep.subr.bf16.mxu0 %v1944_v24 }
  0x9b   : > { %1775 = vmatpush3.bf16.msra.mxu1 %v1955_v14 }
  0x9c   : > { %1776 = vmatprep.subr.bf16.mxu1 %v2100_v4 }
  0x9d   : > { %1737 = vmatpush3.bf16.msra.mxu0 %v1945_v25 }
  0x9e   : > { %1738 = vmatprep.subr.bf16.mxu0 %v1946_v27 }
  0x9f   : > { %1777 = vmatpush3.bf16.msra.mxu1 %v1956_v15 }
  0xa0   : > { %1778 = vmatprep.subr.bf16.mxu1 %v2100_v4 }
  0xa1   : > { %1739 = vmatpush3.bf16.msra.mxu0 %v1947_v29 }
  0xa2   : > { %1740 = vmatprep.subr.bf16.mxu0 %v1948_v30 }
  0xa3   : > { %1779 = vmatpush3.bf16.msra.mxu1 %v1957_v16 }
  0xa4   : > { %1780 = vmatprep.subr.bf16.mxu1 %v2100_v4 }
  0xa5   : > { %1741 = vmatpush3.bf16.msra.mxu0 %v1949_v31 }
  0xa6   : > { %1742 = vmatprep.subr.bf16.mxu0 %v1950_v32  ;;  %v1960_v32 = vld [vmem:[%s2402_s5 + $0x38] sm:$0xff]  }
  0xa7   : > { %1781 = vmatpush3.bf16.msra.mxu1 %v1958_v17 }
  0xa8   : > { %1782 = vmatprep.subr.bf16.mxu1 %v2100_v4 }
  0xa9   : > { %1743 = vmatpush3.bf16.msra.mxu0 %v1951_v33  ;;  %v1961_v33 = vld [vmem:[%s2402_s5 + $0x30] sm:$0xff]  }
  0xaa   : > { %1788 = vmatprep.subr.bf16.mxu0 %v2100_v4 }
  0xab   : > { %1783 = vmatpush3.bf16.msra.mxu1 %v1959_v18 }
  0xac   : > { %1174 = vmatmul.mubr.bf16.vlgmr.msra.gmra.mxu0 %v332_v35 }
  0xad   : > { %1804 = vmatprep.mubr.msk.bf16.mxu0 %vm2101_vm1, %v2100_v4  ;;  %1789 = vmatpush3.bf16.msra.mxu0 %v1960_v32 }
  0xae   : > { %1790 = vmatprep.subr.bf16.mxu0 %v2100_v4 }
  0xb1   : > { %1791 = vmatpush3.bf16.msra.mxu0 %v1961_v33 }
  0xb2   : > { %1792 = vmatprep.subr.bf16.mxu0 %v2100_v4 }
 0x12c   : > { %v1656_v36 = vpop.f32.mrf.mxu0 }
 0x12e   : > { %v1657_v37 = vpop.f32.mrf.mxu0  ;;  %v1678_v38 = vpop.f32.mrf.mxu1 }
 0x12f   : > { %v1658_v52 = vadd.f32 %v1657_v37, %v1656_v36 }
 0x130   : > { %v1659_v39 = vpop.f32.mrf.mxu0  ;;  %v1679_v40 = vpop.f32.mrf.mxu1 }
 0x131   : > { %v1016_v54 = vadd.f32 %v1658_v52, %v1537_v53  ;;  %v1680_v55 = vadd.f32 %v1679_v40, %v1678_v38  ;;  %v1962_v39 = vld [vmem:[%s2402_s5 + $0x28] sm:$0xff]   ;;  %v1963_v40 = vld [vmem:[%s2402_s5 + $0x20] sm:$0xff]  }
 0x132   : > { %v1660_v41 = vpop.f32.mrf.mxu0  ;;  %v1681_v42 = vpop.f32.mrf.mxu1  ;;  %1793 = vmatpush3.bf16.msra.mxu0 %v1962_v39  ;;  %v1627_v52 = vld [vmem:[%s2403_s6] ss:$0 sm:$0xff] }
 0x133   : > { %v1056_v57 = vadd.f32 %v1680_v55, %v1016_v54  ;;  %1794 = vmatprep.subr.bf16.mxu0 %v2100_v4  ;;  %v1964_v41 = vld [vmem:[%s2402_s5 + $0x18] sm:$0xff]   ;;  %v1965_v42 = vld [vmem:[%s2402_s5 + $0x10] sm:$0xff]  }
 0x134   : > { %v1682_v43 = vpop.f32.mrf.mxu1 }
 0x135   : > { %v1966_v43 = vld [vmem:[%s2402_s5 + $0x8] sm:$0xff]  }
 0x136   : > { %1795 = vmatpush3.bf16.msra.mxu0 %v1963_v40 }
 0x137   : > { %1796 = vmatprep.subr.bf16.mxu0 %v2100_v4 }
 0x13a   : > { %1797 = vmatpush3.bf16.msra.mxu0 %v1964_v41 }
 0x13b   : > { %1798 = vmatprep.subr.bf16.mxu0 %v2100_v4 }
 0x13e   : > { %1799 = vmatpush3.bf16.msra.mxu0 %v1965_v42 }
 0x13f   : > { %1800 = vmatprep.subr.bf16.mxu0 %v2100_v4 }
 0x142   : > { %1801 = vmatpush3.bf16.msra.mxu0 %v1966_v43 }
 0x143   : > { %1802 = vmatprep.subr.bf16.mxu0 %v2100_v4 }
 0x14c   : > { %v1700_v44 = vpop.f32.mrf.mxu0 }
 0x14e   : > { %v1701_v45 = vpop.f32.mrf.mxu0  ;;  %v1722_v46 = vpop.f32.mrf.mxu1 }
 0x14f   : > { %v1702_v56 = vadd.f32 %v1701_v45, %v1700_v44  ;;  %v1967_v44 = vld [vmem:[%s2402_s5] sm:$0xff]  }
 0x150   : > { %v1703_v47 = vpop.f32.mrf.mxu0  ;;  %v1723_v48 = vpop.f32.mrf.mxu1  ;;  %1803 = vmatpush3.bf16.msra.mxu0 %v1967_v44 }
 0x151   : > { %v1096_v58 = vadd.f32 %v1702_v56, %v1056_v57  ;;  %v1724_v59 = vadd.f32 %v1723_v48, %v1722_v46 }
 0x152   : > { %v1704_v49 = vpop.f32.mrf.mxu0  ;;  %v1725_v50 = vpop.f32.mrf.mxu1 }
 0x153   : > { %v1136_v62 = vadd.f32 %v1724_v59, %v1096_v58 }
 0x154   : > { %v1726_v51 = vpop.f32.mrf.mxu1 }
 0x16c   : > { %v1744_v60 = vpop.f32.mrf.mxu0 }
 0x16e   : > { %v1745_v61 = vpop.f32.mrf.mxu0 }
 0x16f   : > { %v1746_v63 = vadd.f32 %v1745_v61, %v1744_v60 }
 0x170   : > { %v1747_v0 = vpop.f32.mrf.mxu0 }
 0x171   : > { %v1176_v1 = vadd.f32 %v1746_v63, %v1136_v62 }
 0x172   : > { %v1748_v2 = vpop.f32.mrf.mxu0 }
 0x173   : > { %1181 = vadd.xlane.f32.xlu0 %v1176_v1 }
 0x1fc   : > { %v1182_v8 = vpop.xlane.xlu0 %1181 }
 0x1fd   : > { %v1183_v9 = vmul.f32 0.03125, %v1182_v8 }
 0x1ff   : > { %v1184_v10 = vsub.f32 %v1176_v1, %v1183_v9 }
 0x201   : > { %v1187_v11 = vsel %vm313_vm0, %v1184_v10, 0.0 }
 0x202   : > { %v1188_v12 = vmul.f32 %v1187_v11, %v1187_v11 }
 0x204   : > { %1189 = vadd.xlane.f32.xlu0 %v1188_v12 }
 0x28d   : > { %v1190_v19 = vpop.xlane.xlu0 %1189 }
 0x28e   : > { %v1191_v20 = vmul.f32 0.03125, %v1190_v19 }
 0x290   : > { %v1192_v21 = vadd.f32 1e-05, %v1191_v20 }
 0x292   : > { %1968 = vrsqrt.f32 %v1192_v21 }
 0x29f   : > { %v1969_v22 = vpop.eup %1968 }
 0x2a0   : > { %v1194_v23 = vmul.f32 %v1969_v22, %v1187_v11 }
 0x2a2   : > { %v1195_v24 = vmax.f32 %v1194_v23, 0.0 }
 0x2a4   : > { %v1196_v25 = vpack.c.bf16 %v1195_v24, %v1195_v24 }
 0x2a6   : > { %1785 = vmatmul.mubr.bf16.vlgmr.msra.gmra.mxu1 %v1196_v25 }
 0x366   : > { %v1302_v27 = vpop.f32.mrf.mxu1 }
 0x367   : > { %v1303_v28 = vadd.f32 %v1618_v26, %v1302_v27 }
 0x368   : > { %v1786_v29 = vpop.f32.mrf.mxu1 }
 0x369   : > { %1308 = vadd.xlane.f32.xlu1 %v1303_v28 }
 0x36a   : > { %v1305_v30 = vpop.f32.mrf.mxu1 }
 0x36c   : > { %v1787_v31 = vpop.f32.mrf.mxu1 }
 0x3f2   : > { %v1309_v34 = vpop.xlane.xlu1 %1308 }
 0x3f3   : > { %v1310_v35 = vmul.f32 0.03125, %v1309_v34 }
 0x3f5   : > { %v1311_v36 = vsub.f32 %v1303_v28, %v1310_v35 }
 0x3f7   : > { %v1312_v37 = vsel %vm313_vm0, %v1311_v36, 0.0 }
 0x3f8   : > { %v1313_v38 = vmul.f32 %v1312_v37, %v1312_v37 }
 0x3fa   : > { %1314 = vadd.xlane.f32.xlu1 %v1313_v38 }
 0x483   : > { %v1315_v45 = vpop.xlane.xlu1 %1314 }
 0x484   : > { %v1316_v46 = vmul.f32 0.03125, %v1315_v45 }
 0x486   : > { %v1317_v47 = vadd.f32 1e-05, %v1316_v46 }
 0x488   : > { %1970 = vrsqrt.f32 %v1317_v47 }
 0x495   : > { %v1971_v48 = vpop.eup %1970 }
 0x496   : > { %v1319_v49 = vmul.f32 %v1971_v48, %v1312_v37 }
 0x498   : > { %v1320_v50 = vmax.f32 %v1319_v49, 0.0 }
 0x49a   : > { %v1321_v51 = vpack.c.bf16 %v1320_v50, %v1320_v50 }
 0x49c   : > { %1805 = vmatmul.mubr.bf16.vlgmr.msra.gmra.mxu0 %v1321_v51 }
 0x55c   : > { %v1427_v53 = vpop.f32.mrf.mxu0 }
 0x55d   : > { %v1428_v54 = vadd.f32 %v1627_v52, %v1427_v53 }
 0x55e   : > { %v1806_v55 = vpop.f32.mrf.mxu0 }
 0x55f   : > { %1434 = vst.msk [vmem:[%s309_s23] sm:$0xff] %vm1433_vm2, %v1428_v54 }
 0x560   : > { %v1430_v56 = vpop.f32.mrf.mxu0 }
 0x561   : > { %2039 = shalt.err (!%p2036_p0)
}
 0x562   : > { %s2040_s16 = scalar_lea.hbm %s2355_s11, 128  ;;  %s2044_s18 = scalar_lea.hbm %s2404_s7, 512 }
 0x563   : > { %p2041_p10 = scmp.ne.s32.totalorder %s2355_s11, %s2040_s16  ;;  %p2045_p1 = scmp.lt.s32.totalorder %s2355_s11, %s2404_s7 }
 0x564   : > { %p2046_p4 = scmp.lt.s32.totalorder %s2044_s18, %s2040_s16 }
 0x565   : > { %p2042_p9 = pnand %p2041_p10, %p2423_p3 }
 0x566   : > { %p2047_p6 = por %p2046_p4, %p2045_p1 }
 0x567   : > { %p2043_p11 = pneg %p2042_p9 }
 0x569   : > { %p2048_p8 = pnand %p2047_p6, %p2043_p11 }
 0x56b   : > { %2051 = shalt.err (!%p2048_p8)
}
 0x56c   : > { %1817 = dma.vmem_to_hbm [thread:$0]  (%p2423_p3), %s2357_s14, 128, %s2355_s11, %s1436_s30   ;;  %v1807_v57 = vpop.f32.mrf.mxu0 }
 0x56d PF: > { %p1834_p5 = scmp.ge.s32.totalorder %s2094_s27, 2  ;;  %s1461_s10 = sand.u32 1, %s2082_s24  }
 0x56e   : > { %p2424_p7 = scmp.ne.s32.totalorder %s2411_s8, 0  ;;  %s1462_s23 = scalar_lea.sflag [#allocation4], %s1461_s10 }
 0x570   : > { %p1828_p12 = pnand %p1834_p5, %p2424_p7 }
 0x572   : > { %p1829_p2 = pneg %p1828_p12 }
 0x574   : > { %2077 = dma.done.wait (%p1829_p2), %s1462_s23, 128  }
 0x575   : > { %2079 = vsyncadd (%p1829_p2), %s1462_s23, 4294967168  ;;  %s2425_s22 = sld [smem:[#allocation11_spill]]  ;;  %p21_p13 = scmp.ge.s32.totalorder %s2196_s13, 6  }
 0x576   : > { %s2426_s24 = smov %s2086_s25  ;;  %s2427_s25 = smov %s2090_s26 }
 0x577   : > { %s2429_s27 = smov %s2196_s13  ;;  %23 = sbr.rel (!%p21_p13) target bundleno = 8 (0x8), region = 97 }
 0x57b   : > { %s2428_s26 = smov %s2425_s22 }
 0x57c   :  { %1467 = vsyncpa [#allocation3], 1 }
 0x57d   :  { %1469 = vsyncpa [#allocation3 + $0x1], 1 }
 0x57e   :  { %1470 = vsyncpa [#allocation6], 1 }
 0x57f   :  { %1471 = vsyncpa [#allocation4], 1 }
 0x580   :  { %1473 = vsyncpa [#allocation4 + $0x1], 1 }

</bundles_post_ra>
